<compile_context>
chip_gen: v5e
topology: v5e:2x2
jax: 0.10.0
libtpu: 0.0.40
codegen_flags: <defaults>
</compile_context>

<pallas_src>
import functools
import math

import jax
import jax.numpy as jnp
from jax.experimental import pallas as pl
from jax.experimental.pallas import tpu as pltpu


def _round_up(x, m):
    return (x + m - 1) // m * m


# ------------------------------ Pallas kernel --------------------------------
def _fused_conv_bn_lrelu_kernel(a_ref, w1_ref, w2_ref, mask_ref,
                                o_ref, stk_ref, h1e_ref, *,
                                mp, padc, wp, m_valid, eps, neg_slope,
                                cin_p, cout_p):
    """Fused conv1+BN1+LReLU1+conv2+BN2+LReLU2.

    Layout: channel-major activations (C, N*Hp*Wp) with the flattened
    zero-padded spatial grid on the lane axis.  A 3x3 tap at offset (dy,dx) is
    a shifted lane-slice of the slab (shift = (dy-1)*Wp + (dx-1)).  The 9 taps
    are stacked along the sublane/K axis into `stk_ref` (in-VMEM im2col) so
    each conv is ONE (Cout_p, 9*K) x (9*K, M) MXU dot.  `mask` is 1 on valid
    interior columns, 0 on the 1-pixel halo ring.
    """
    mask = mask_ref[...]                                     # (1, Mp) f32
    inv_m = 1.0 / float(m_valid)

    def conv3x3(src_ref, w_ref, k):
        # in-VMEM im2col: 9 tile-aligned copies into the stacked-K scratch.
        for dy in range(3):
            for dx in range(3):
                t = dy * 3 + dx
                off = (dy - 1) * wp + (dx - 1)
                stk_ref[t * k:(t + 1) * k, :] = src_ref[:, pl.ds(padc + off, mp)]
        # one MXU contraction, K = 9*k (bf16 operands, f32 accumulation).
        return jnp.dot(w_ref[...], stk_ref[0:9 * k, :],
                       preferred_element_type=jnp.float32)

    def bn_lrelu(acc, apply_mask_out):
        # BatchNorm2d (training mode): biased batch stats over the valid
        # (n, h, w) positions only.  Single pass: var = E[x^2] - mean^2 (f32).
        am = acc * mask
        s1 = jnp.sum(am, axis=1, keepdims=True)
        s2 = jnp.sum(acc * am, axis=1, keepdims=True)
        mean = s1 * inv_m
        var = jnp.maximum(s2 * inv_m - mean * mean, 0.0)
        y = (acc - mean) * jax.lax.rsqrt(var + eps)          # gamma=1, beta=0
        # nn.LeakyReLU(True): negative_slope == 1.0 -> exact identity.
        if neg_slope != 1.0:
            y = jnp.where(y >= 0.0, y, neg_slope * y)
        if apply_mask_out:
            # Zeroing the halo ring doubles as the zero padding for conv2.
            y = y * mask
        return y

    # ---- stage 1 ----
    h1 = bn_lrelu(conv3x3(a_ref, w1_ref, cin_p), apply_mask_out=True)

    # ---- stage 2: h1 stays on-chip in a zero-banded bf16 VMEM scratch ----
    # Zero only the left/right padc halo bands (lane-aligned stores); the Mp
    # interior is fully overwritten right after.
    total = mp + 2 * padc
    right0 = (padc + mp) // 128 * 128          # aligned start covering right band
    h1e_ref[:, pl.ds(0, padc)] = jnp.zeros((cout_p, padc), h1e_ref.dtype)
    h1e_ref[:, pl.ds(right0, total - right0)] = jnp.zeros(
        (cout_p, total - right0), h1e_ref.dtype)
    h1e_ref[:, pl.ds(padc, mp)] = h1.astype(h1e_ref.dtype)

    # Stage-2 output is not re-masked: halo columns are cropped in the epilogue.
    o_ref[...] = bn_lrelu(conv3x3(h1e_ref, w2_ref, cout_p), apply_mask_out=False)


# -------------------------------- wrapper -------------------------------------
def _maxpool2d_ceil(x, k):
    """MaxPool2d(kernel_size=k, stride=k, ceil_mode=True) on NCHW."""
    n, c, h, w = x.shape
    ho, wo = -(-h // k), -(-w // k)
    ph, pw = ho * k - h, wo * k - w
    if ph or pw:
        x = jnp.pad(x, ((0, 0), (0, 0), (0, ph), (0, pw)),
                    constant_values=-jnp.inf)
    return x.reshape(n, c, ho, k, wo, k).max(axis=(3, 5))


def conv_block_no_normalization(x, w1, b1, w2, b2, *, pooling=2, eps=1e-5,
                                negative_slope=1.0,
                                compute_dtype=jnp.bfloat16):
    """Forward of Conv_block_NoNormalization. x: (N, Cin, H, W) f32, returns NCHW.

    b1/b2 are accepted for API parity with the PyTorch module but are not sent
    to the kernel: with training-mode BatchNorm (gamma=1, beta=0) the conv bias
    cancels exactly inside the normalization.
    """
    del b1, b2  # cancel under training-mode BN; kept in the pure-JAX reference
    N, Cin, H, W = x.shape
    Cout = w1.shape[0]
    Hp, Wp = H + 2, W + 2
    Mp = N * Hp * Wp
    padc = _round_up(Wp + 1, 128)                 # lane-aligned halo for the 9 shifts
    # Pad contracted/channel dims to the sublane-packing granularity of the
    # compute dtype (16 for bf16) so the stacked-K stores are full-tile aligned.
    pack = 8 * (4 // jnp.dtype(compute_dtype).itemsize)
    cin_p = _round_up(Cin, pack)
    cout_p = _round_up(Cout, pack)
    kmax = max(cin_p, cout_p)

    # ---- tiny one-shot layout prep in XLA ----
    # channel-major, zero-pad channels + spatial halo in ONE pad, flatten
    # (N, Hp, Wp) onto the lane axis, then add `padc` zero columns each side.
    xt = jnp.transpose(x, (1, 0, 2, 3))                                   # (Cin,N,H,W)
    xt = jnp.pad(xt, ((0, cin_p - Cin), (0, 0), (1, 1), (1, 1)))          # ch + spatial
    a = xt.reshape(cin_p, Mp)
    a = jnp.pad(a, ((0, 0), (padc, padc))).astype(compute_dtype)          # lane bands

    def prep_w(w, k_in, k_in_p):
        # (Cout, k_in, 3, 3) -> (Cout_p, 9*k_in_p), K laid out tap-major /
        # channel-minor to match the in-kernel stacked-K scratch.
        wt = jnp.transpose(w, (0, 2, 3, 1))                               # (Cout,3,3,k_in)
        wt = jnp.pad(wt, ((0, cout_p - Cout), (0, 0), (0, 0), (0, k_in_p - k_in)))
        return wt.reshape(cout_p, 9 * k_in_p).astype(compute_dtype)

    w1_t, w2_t = prep_w(w1, Cin, cin_p), prep_w(w2, Cout, cout_p)

    # 1 on valid interior columns of the padded grid, 0 on the halo ring.
    hp_i = jnp.arange(Hp)[:, None]
    wp_i = jnp.arange(Wp)[None, :]
    m2d = ((hp_i >= 1) & (hp_i <= H) &
           (wp_i >= 1) & (wp_i <= W)).astype(jnp.float32)
    mask = jnp.tile(m2d.reshape(-1), (N,)).reshape(1, Mp)

    # BN's full-batch stats gate conv2 on a global reduction -> keep the fused
    # problem VMEM-resident.  Gate + limit are generation-aware (v7x: 64 MiB).
    try:
        vmem_cap = int(pltpu.get_tpu_info().vmem_capacity_bytes)
    except Exception:
        vmem_cap = 64 * 1024 * 1024
    vmem_budget = min(vmem_cap // 2, 64 * 1024 * 1024)

    itm = jnp.dtype(compute_dtype).itemsize
    vmem_est = (2 * (a.size * itm + w1_t.size * itm + w2_t.size * itm
                     + mask.size * 4 + cout_p * Mp * 4)      # dbl-buffered ins/out
                + 9 * kmax * Mp * itm                         # stacked-K scratch
                + cout_p * (Mp + 2 * padc) * itm)             # h1 slab scratch
    assert vmem_est < (vmem_budget * 3) // 4, \
        "problem too large for the fused single-tile kernel"

    kernel = functools.partial(
        _fused_conv_bn_lrelu_kernel,
        mp=Mp, padc=padc, wp=Wp, m_valid=N * H * W, eps=eps,
        neg_slope=negative_slope, cin_p=cin_p, cout_p=cout_p)

    h2_flat = pl.pallas_call(
        kernel,
        out_shape=jax.ShapeDtypeStruct((cout_p, Mp), jnp.float32),
        grid=(1,),
        in_specs=[
            pl.BlockSpec((cin_p, Mp + 2 * padc), lambda i: (0, 0)),
            pl.BlockSpec((cout_p, 9 * cin_p), lambda i: (0, 0)),
            pl.BlockSpec((cout_p, 9 * cout_p), lambda i: (0, 0)),
            pl.BlockSpec((1, Mp), lambda i: (0, 0)),
        ],
        out_specs=pl.BlockSpec((cout_p, Mp), lambda i: (0, 0)),
        scratch_shapes=[
            pltpu.VMEM((9 * kmax, Mp), compute_dtype),          # stacked-K im2col
            pltpu.VMEM((cout_p, Mp + 2 * padc), compute_dtype),  # h1 slab
        ],
        compiler_params=pltpu.CompilerParams(
            dimension_semantics=("arbitrary",),
            vmem_limit_bytes=vmem_budget,
        ),
    )(a, w1_t, w2_t, mask)

    # ---- tiny epilogue in XLA: un-flatten, crop halo/channel pad, NCHW ----
    h2 = h2_flat[:Cout].reshape(Cout, N, Hp, Wp)[:, :, 1:H + 1, 1:W + 1]
    h2 = jnp.transpose(h2, (1, 0, 2, 3))
    # TODO(synk): MaxPool2d(ceil_mode=True) finalization stays in plain JAX (acts
    # on a ~16 KB tensor); fuse into the kernel once the M-tiled variant lands.
    return _maxpool2d_ceil(h2, pooling)


# -------------------------- pure-JAX reference --------------------------------
def _reference_forward(x, w1, b1, w2, b2, *, pooling=2, eps=1e-5,
                       negative_slope=1.0, compute_dtype=jnp.bfloat16):
    """Plain-JAX reference (keeps the conv bias; BN-train cancels it)."""
    def conv(z, w, b):
        zr = z.astype(compute_dtype).astype(jnp.float32)
        wr = w.astype(compute_dtype).astype(jnp.float32)
        y = jax.lax.conv_general_dilated(
            zr, wr, window_strides=(1, 1), padding=((1, 1), (1, 1)),
            dimension_numbers=("NCHW", "OIHW", "NCHW"))
        return y + b.reshape(1, -1, 1, 1)

    def bn_lrelu(y):
        mean = jnp.mean(y, axis=(0, 2, 3), keepdims=True)
        var = jnp.mean((y - mean) ** 2, axis=(0, 2, 3), keepdims=True)
        z = (y - mean) * jax.lax.rsqrt(var + eps)
        if negative_slope != 1.0:
            z = jnp.where(z >= 0.0, z, negative_slope * z)
        return z

    h1 = bn_lrelu(conv(x, w1, b1))
    h2 = bn_lrelu(conv(h1, w2, b2))
    return _maxpool2d_ceil(h2, pooling)


# --------------------------- deterministic init --------------------------------
def _xavier_normal(key, cout, cin, kh, kw):
    # nn.init.xavier_normal_ (gain=1): std = sqrt(2 / (fan_in + fan_out))
    fan_in, fan_out = cin * kh * kw, cout * kh * kw
    std = math.sqrt(2.0 / (fan_in + fan_out))
    return std * jax.random.normal(key, (cout, cin, kh, kw), jnp.float32)


def _conv_bias_uniform(key, cin, kh, kw, cout):
    # PyTorch Conv2d default bias init: U(-1/sqrt(fan_in), 1/sqrt(fan_in))
    bound = 1.0 / math.sqrt(cin * kh * kw)
    return jax.random.uniform(key, (cout,), jnp.float32, -bound, bound)


# ------------------------------------ main -------------------------------------
if __name__ == "__main__":
    key = jax.random.PRNGKey(0)
    kx, kw1, kb1, kw2, kb2 = jax.random.split(key, 5)

    N, Cin, H, W, Cout, POOL = 2, 4, 16, 16, 8, 2

    x = jax.random.normal(kx, (N, Cin, H, W), jnp.float32)
    w1 = _xavier_normal(kw1, Cout, Cin, 3, 3)
    b1 = _conv_bias_uniform(kb1, Cin, 3, 3, Cout)
    w2 = _xavier_normal(kw2, Cout, Cout, 3, 3)
    b2 = _conv_bias_uniform(kb2, Cout, 3, 3, Cout)

    out = conv_block_no_normalization(x, w1, b1, w2, b2, pooling=POOL)
    out = jax.block_until_ready(out)

    ho, wo = -(-H // POOL), -(-W // POOL)
    assert out.shape == (N, Cout, ho, wo), out.shape
    assert out.dtype == jnp.float32
    assert bool(jnp.all(jnp.isfinite(out)))

    ref = _reference_forward(x, w1, b1, w2, b2, pooling=POOL)
    assert bool(jnp.allclose(out, ref, rtol=5e-2, atol=5e-2)), (
        "max abs diff vs reference: %f" % float(jnp.max(jnp.abs(out - ref))))

    print("KERNEL_OK")
</pallas_src>

<mosaic_0001>
module attributes {stable_mosaic.version = 11 : i64} {
  func.func @_fused_conv_bn_lrelu_kernel(%arg0: i32, %arg1: memref<16x904xbf16, #tpu.memory_space<vmem>>, %arg2: memref<16x144xbf16, #tpu.memory_space<vmem>>, %arg3: memref<16x144xbf16, #tpu.memory_space<vmem>>, %arg4: memref<1x648xf32, #tpu.memory_space<vmem>>, %arg5: memref<16x648xf32, #tpu.memory_space<vmem>>, %arg6: memref<144x648xbf16, #tpu.memory_space<vmem>>, %arg7: memref<16x904xbf16, #tpu.memory_space<vmem>>) attributes {dimension_semantics = [#tpu.dimension_semantics<arbitrary>], iteration_bounds = array<i64: 1>, scalar_prefetch = 0 : i64, scratch_operands = 2 : i64, tpu.core_type = #tpu.core_type<tc>, window_params = [{pipeline_mode = #tpu.pipeline_mode<synchronous>, transform_indices = @transform_0, window_bounds = array<i64: 16, 904>}, {pipeline_mode = #tpu.pipeline_mode<synchronous>, transform_indices = @transform_1, window_bounds = array<i64: 16, 144>}, {pipeline_mode = #tpu.pipeline_mode<synchronous>, transform_indices = @transform_2, window_bounds = array<i64: 16, 144>}, {pipeline_mode = #tpu.pipeline_mode<synchronous>, transform_indices = @transform_3, window_bounds = array<i64: 1, 648>}, {pipeline_mode = #tpu.pipeline_mode<synchronous>, transform_indices = @transform_4, window_bounds = array<i64: 16, 648>}]} {
    %c0 = arith.constant 0 : index
    %c0_0 = arith.constant 0 : index
    %0 = vector.load %arg4[%c0, %c0_0] : memref<1x648xf32, #tpu.memory_space<vmem>>, vector<1x648xf32>
    %c0_1 = arith.constant 0 : index
    %c109 = arith.constant 109 : index
    %1 = vector.load %arg1[%c0_1, %c109] : memref<16x904xbf16, #tpu.memory_space<vmem>>, vector<16x648xbf16>
    %c0_2 = arith.constant 0 : index
    %c0_3 = arith.constant 0 : index
    %2 = vector.load %arg6[%c0_2, %c0_3] : memref<144x648xbf16, #tpu.memory_space<vmem>>, vector<16x648xbf16>
    tpu.vector_store %arg6[%c0_2, %c0_3], %1 {strides = array<i32>} : memref<144x648xbf16, #tpu.memory_space<vmem>>, vector<16x648xbf16>,
    %c0_4 = arith.constant 0 : index
    %c110 = arith.constant 110 : index
    %3 = vector.load %arg1[%c0_4, %c110] : memref<16x904xbf16, #tpu.memory_space<vmem>>, vector<16x648xbf16>
    %c16 = arith.constant 16 : index
    %c0_5 = arith.constant 0 : index
    %4 = vector.load %arg6[%c16, %c0_5] : memref<144x648xbf16, #tpu.memory_space<vmem>>, vector<16x648xbf16>
    tpu.vector_store %arg6[%c16, %c0_5], %3 {strides = array<i32>} : memref<144x648xbf16, #tpu.memory_space<vmem>>, vector<16x648xbf16>,
    %c0_6 = arith.constant 0 : index
    %c111 = arith.constant 111 : index
    %5 = vector.load %arg1[%c0_6, %c111] : memref<16x904xbf16, #tpu.memory_space<vmem>>, vector<16x648xbf16>
    %c32 = arith.constant 32 : index
    %c0_7 = arith.constant 0 : index
    %6 = vector.load %arg6[%c32, %c0_7] : memref<144x648xbf16, #tpu.memory_space<vmem>>, vector<16x648xbf16>
    tpu.vector_store %arg6[%c32, %c0_7], %5 {strides = array<i32>} : memref<144x648xbf16, #tpu.memory_space<vmem>>, vector<16x648xbf16>,
    %c0_8 = arith.constant 0 : index
    %c127 = arith.constant 127 : index
    %7 = vector.load %arg1[%c0_8, %c127] : memref<16x904xbf16, #tpu.memory_space<vmem>>, vector<16x648xbf16>
    %c48 = arith.constant 48 : index
    %c0_9 = arith.constant 0 : index
    %8 = vector.load %arg6[%c48, %c0_9] : memref<144x648xbf16, #tpu.memory_space<vmem>>, vector<16x648xbf16>
    tpu.vector_store %arg6[%c48, %c0_9], %7 {strides = array<i32>} : memref<144x648xbf16, #tpu.memory_space<vmem>>, vector<16x648xbf16>,
    %c0_10 = arith.constant 0 : index
    %c128 = arith.constant 128 : index
    %9 = vector.load %arg1[%c0_10, %c128] : memref<16x904xbf16, #tpu.memory_space<vmem>>, vector<16x648xbf16>
    %c64 = arith.constant 64 : index
    %c0_11 = arith.constant 0 : index
    %10 = vector.load %arg6[%c64, %c0_11] : memref<144x648xbf16, #tpu.memory_space<vmem>>, vector<16x648xbf16>
    tpu.vector_store %arg6[%c64, %c0_11], %9 {strides = array<i32>} : memref<144x648xbf16, #tpu.memory_space<vmem>>, vector<16x648xbf16>,
    %c0_12 = arith.constant 0 : index
    %c129 = arith.constant 129 : index
    %11 = vector.load %arg1[%c0_12, %c129] : memref<16x904xbf16, #tpu.memory_space<vmem>>, vector<16x648xbf16>
    %c80 = arith.constant 80 : index
    %c0_13 = arith.constant 0 : index
    %12 = vector.load %arg6[%c80, %c0_13] : memref<144x648xbf16, #tpu.memory_space<vmem>>, vector<16x648xbf16>
    tpu.vector_store %arg6[%c80, %c0_13], %11 {strides = array<i32>} : memref<144x648xbf16, #tpu.memory_space<vmem>>, vector<16x648xbf16>,
    %c0_14 = arith.constant 0 : index
    %c145 = arith.constant 145 : index
    %13 = vector.load %arg1[%c0_14, %c145] : memref<16x904xbf16, #tpu.memory_space<vmem>>, vector<16x648xbf16>
    %c96 = arith.constant 96 : index
    %c0_15 = arith.constant 0 : index
    %14 = vector.load %arg6[%c96, %c0_15] : memref<144x648xbf16, #tpu.memory_space<vmem>>, vector<16x648xbf16>
    tpu.vector_store %arg6[%c96, %c0_15], %13 {strides = array<i32>} : memref<144x648xbf16, #tpu.memory_space<vmem>>, vector<16x648xbf16>,
    %c0_16 = arith.constant 0 : index
    %c146 = arith.constant 146 : index
    %15 = vector.load %arg1[%c0_16, %c146] : memref<16x904xbf16, #tpu.memory_space<vmem>>, vector<16x648xbf16>
    %c112 = arith.constant 112 : index
    %c0_17 = arith.constant 0 : index
    %16 = vector.load %arg6[%c112, %c0_17] : memref<144x648xbf16, #tpu.memory_space<vmem>>, vector<16x648xbf16>
    tpu.vector_store %arg6[%c112, %c0_17], %15 {strides = array<i32>} : memref<144x648xbf16, #tpu.memory_space<vmem>>, vector<16x648xbf16>,
    %c0_18 = arith.constant 0 : index
    %c147 = arith.constant 147 : index
    %17 = vector.load %arg1[%c0_18, %c147] : memref<16x904xbf16, #tpu.memory_space<vmem>>, vector<16x648xbf16>
    %c128_19 = arith.constant 128 : index
    %c0_20 = arith.constant 0 : index
    %18 = vector.load %arg6[%c128_19, %c0_20] : memref<144x648xbf16, #tpu.memory_space<vmem>>, vector<16x648xbf16>
    tpu.vector_store %arg6[%c128_19, %c0_20], %17 {strides = array<i32>} : memref<144x648xbf16, #tpu.memory_space<vmem>>, vector<16x648xbf16>,
    %c0_21 = arith.constant 0 : index
    %c0_22 = arith.constant 0 : index
    %19 = vector.load %arg2[%c0_21, %c0_22] : memref<16x144xbf16, #tpu.memory_space<vmem>>, vector<16x144xbf16>
    %c0_23 = arith.constant 0 : index
    %c0_24 = arith.constant 0 : index
    %20 = vector.load %arg6[%c0_23, %c0_24] : memref<144x648xbf16, #tpu.memory_space<vmem>>, vector<144x648xbf16>
    %cst = arith.constant dense<0.000000e+00> : vector<16x648xf32>
    %21 = tpu.matmul %19, %20, %cst {dimension_numbers = #tpu.dot_dimension_numbers<[1], [0], [0], [1], [0, 0, 1, 1], [], []>} : vector<16x144xbf16>, vector<144x648xbf16>, vector<16x648xf32> -> vector<16x648xf32>
    %22 = vector.broadcast %0 : vector<1x648xf32> to vector<16x648xf32>
    %23 = arith.mulf %21, %22 : vector<16x648xf32>
    %cst_25 = arith.constant dense<0.000000e+00> : vector<16xf32>
    %24 = vector.multi_reduction <add>, %23, %cst_25 [1] : vector<16x648xf32> to vector<16xf32>
    %25 = vector.shape_cast %24 : vector<16xf32> to vector<16x1xf32>
    %26 = arith.mulf %21, %23 : vector<16x648xf32>
    %cst_26 = arith.constant dense<0.000000e+00> : vector<16xf32>
    %27 = vector.multi_reduction <add>, %26, %cst_26 [1] : vector<16x648xf32> to vector<16xf32>
    %28 = vector.shape_cast %27 : vector<16xf32> to vector<16x1xf32>
    %cst_27 = arith.constant 0.001953125 : f32
    %29 = vector.broadcast %cst_27 : f32 to vector<16x1xf32>
    %30 = arith.mulf %25, %29 : vector<16x1xf32>
    %cst_28 = arith.constant 0.001953125 : f32
    %31 = vector.broadcast %cst_28 : f32 to vector<16x1xf32>
    %32 = arith.mulf %28, %31 : vector<16x1xf32>
    %33 = arith.mulf %30, %30 : vector<16x1xf32>
    %34 = arith.subf %32, %33 : vector<16x1xf32>
    %cst_29 = arith.constant 0.000000e+00 : f32
    %35 = vector.broadcast %cst_29 : f32 to vector<16x1xf32>
    %36 = arith.maximumf %34, %35 : vector<16x1xf32>
    %37 = vector.broadcast %30 : vector<16x1xf32> to vector<16x648xf32>
    %38 = arith.subf %21, %37 : vector<16x648xf32>
    %cst_30 = arith.constant 9.99999974E-6 : f32
    %39 = vector.broadcast %cst_30 : f32 to vector<16x1xf32>
    %40 = arith.addf %36, %39 : vector<16x1xf32>
    %41 = math.rsqrt %40 : vector<16x1xf32>
    %42 = vector.broadcast %41 : vector<16x1xf32> to vector<16x648xf32>
    %43 = arith.mulf %38, %42 : vector<16x648xf32>
    %44 = vector.broadcast %0 : vector<1x648xf32> to vector<16x648xf32>
    %45 = arith.mulf %43, %44 : vector<16x648xf32>
    %cst_31 = arith.constant 0.000000e+00 : bf16
    %46 = vector.broadcast %cst_31 : bf16 to vector<16x128xbf16>
    %c0_32 = arith.constant 0 : index
    %c0_33 = arith.constant 0 : index
    %47 = vector.load %arg7[%c0_32, %c0_33] : memref<16x904xbf16, #tpu.memory_space<vmem>>, vector<16x128xbf16>
    tpu.vector_store %arg7[%c0_32, %c0_33], %46 {strides = array<i32>} : memref<16x904xbf16, #tpu.memory_space<vmem>>, vector<16x128xbf16>,
    %cst_34 = arith.constant 0.000000e+00 : bf16
    %48 = vector.broadcast %cst_34 : bf16 to vector<16x136xbf16>
    %c0_35 = arith.constant 0 : index
    %c768 = arith.constant 768 : index
    %49 = vector.load %arg7[%c0_35, %c768] : memref<16x904xbf16, #tpu.memory_space<vmem>>, vector<16x136xbf16>
    tpu.vector_store %arg7[%c0_35, %c768], %48 {strides = array<i32>} : memref<16x904xbf16, #tpu.memory_space<vmem>>, vector<16x136xbf16>,
    %50 = arith.truncf %45 : vector<16x648xf32> to vector<16x648xbf16>
    %c0_36 = arith.constant 0 : index
    %c128_37 = arith.constant 128 : index
    %51 = vector.load %arg7[%c0_36, %c128_37] : memref<16x904xbf16, #tpu.memory_space<vmem>>, vector<16x648xbf16>
    tpu.vector_store %arg7[%c0_36, %c128_37], %50 {strides = array<i32>} : memref<16x904xbf16, #tpu.memory_space<vmem>>, vector<16x648xbf16>,
    %c0_38 = arith.constant 0 : index
    %c109_39 = arith.constant 109 : index
    %52 = vector.load %arg7[%c0_38, %c109_39] : memref<16x904xbf16, #tpu.memory_space<vmem>>, vector<16x648xbf16>
    %c0_40 = arith.constant 0 : index
    %c0_41 = arith.constant 0 : index
    %53 = vector.load %arg6[%c0_40, %c0_41] : memref<144x648xbf16, #tpu.memory_space<vmem>>, vector<16x648xbf16>
    tpu.vector_store %arg6[%c0_40, %c0_41], %52 {strides = array<i32>} : memref<144x648xbf16, #tpu.memory_space<vmem>>, vector<16x648xbf16>,
    %c0_42 = arith.constant 0 : index
    %c110_43 = arith.constant 110 : index
    %54 = vector.load %arg7[%c0_42, %c110_43] : memref<16x904xbf16, #tpu.memory_space<vmem>>, vector<16x648xbf16>
    %c16_44 = arith.constant 16 : index
    %c0_45 = arith.constant 0 : index
    %55 = vector.load %arg6[%c16_44, %c0_45] : memref<144x648xbf16, #tpu.memory_space<vmem>>, vector<16x648xbf16>
    tpu.vector_store %arg6[%c16_44, %c0_45], %54 {strides = array<i32>} : memref<144x648xbf16, #tpu.memory_space<vmem>>, vector<16x648xbf16>,
    %c0_46 = arith.constant 0 : index
    %c111_47 = arith.constant 111 : index
    %56 = vector.load %arg7[%c0_46, %c111_47] : memref<16x904xbf16, #tpu.memory_space<vmem>>, vector<16x648xbf16>
    %c32_48 = arith.constant 32 : index
    %c0_49 = arith.constant 0 : index
    %57 = vector.load %arg6[%c32_48, %c0_49] : memref<144x648xbf16, #tpu.memory_space<vmem>>, vector<16x648xbf16>
    tpu.vector_store %arg6[%c32_48, %c0_49], %56 {strides = array<i32>} : memref<144x648xbf16, #tpu.memory_space<vmem>>, vector<16x648xbf16>,
    %c0_50 = arith.constant 0 : index
    %c127_51 = arith.constant 127 : index
    %58 = vector.load %arg7[%c0_50, %c127_51] : memref<16x904xbf16, #tpu.memory_space<vmem>>, vector<16x648xbf16>
    %c48_52 = arith.constant 48 : index
    %c0_53 = arith.constant 0 : index
    %59 = vector.load %arg6[%c48_52, %c0_53] : memref<144x648xbf16, #tpu.memory_space<vmem>>, vector<16x648xbf16>
    tpu.vector_store %arg6[%c48_52, %c0_53], %58 {strides = array<i32>} : memref<144x648xbf16, #tpu.memory_space<vmem>>, vector<16x648xbf16>,
    %c0_54 = arith.constant 0 : index
    %c128_55 = arith.constant 128 : index
    %60 = vector.load %arg7[%c0_54, %c128_55] : memref<16x904xbf16, #tpu.memory_space<vmem>>, vector<16x648xbf16>
    %c64_56 = arith.constant 64 : index
    %c0_57 = arith.constant 0 : index
    %61 = vector.load %arg6[%c64_56, %c0_57] : memref<144x648xbf16, #tpu.memory_space<vmem>>, vector<16x648xbf16>
    tpu.vector_store %arg6[%c64_56, %c0_57], %60 {strides = array<i32>} : memref<144x648xbf16, #tpu.memory_space<vmem>>, vector<16x648xbf16>,
    %c0_58 = arith.constant 0 : index
    %c129_59 = arith.constant 129 : index
    %62 = vector.load %arg7[%c0_58, %c129_59] : memref<16x904xbf16, #tpu.memory_space<vmem>>, vector<16x648xbf16>
    %c80_60 = arith.constant 80 : index
    %c0_61 = arith.constant 0 : index
    %63 = vector.load %arg6[%c80_60, %c0_61] : memref<144x648xbf16, #tpu.memory_space<vmem>>, vector<16x648xbf16>
    tpu.vector_store %arg6[%c80_60, %c0_61], %62 {strides = array<i32>} : memref<144x648xbf16, #tpu.memory_space<vmem>>, vector<16x648xbf16>,
    %c0_62 = arith.constant 0 : index
    %c145_63 = arith.constant 145 : index
    %64 = vector.load %arg7[%c0_62, %c145_63] : memref<16x904xbf16, #tpu.memory_space<vmem>>, vector<16x648xbf16>
    %c96_64 = arith.constant 96 : index
    %c0_65 = arith.constant 0 : index
    %65 = vector.load %arg6[%c96_64, %c0_65] : memref<144x648xbf16, #tpu.memory_space<vmem>>, vector<16x648xbf16>
    tpu.vector_store %arg6[%c96_64, %c0_65], %64 {strides = array<i32>} : memref<144x648xbf16, #tpu.memory_space<vmem>>, vector<16x648xbf16>,
    %c0_66 = arith.constant 0 : index
    %c146_67 = arith.constant 146 : index
    %66 = vector.load %arg7[%c0_66, %c146_67] : memref<16x904xbf16, #tpu.memory_space<vmem>>, vector<16x648xbf16>
    %c112_68 = arith.constant 112 : index
    %c0_69 = arith.constant 0 : index
    %67 = vector.load %arg6[%c112_68, %c0_69] : memref<144x648xbf16, #tpu.memory_space<vmem>>, vector<16x648xbf16>
    tpu.vector_store %arg6[%c112_68, %c0_69], %66 {strides = array<i32>} : memref<144x648xbf16, #tpu.memory_space<vmem>>, vector<16x648xbf16>,
    %c0_70 = arith.constant 0 : index
    %c147_71 = arith.constant 147 : index
    %68 = vector.load %arg7[%c0_70, %c147_71] : memref<16x904xbf16, #tpu.memory_space<vmem>>, vector<16x648xbf16>
    %c128_72 = arith.constant 128 : index
    %c0_73 = arith.constant 0 : index
    %69 = vector.load %arg6[%c128_72, %c0_73] : memref<144x648xbf16, #tpu.memory_space<vmem>>, vector<16x648xbf16>
    tpu.vector_store %arg6[%c128_72, %c0_73], %68 {strides = array<i32>} : memref<144x648xbf16, #tpu.memory_space<vmem>>, vector<16x648xbf16>,
    %c0_74 = arith.constant 0 : index
    %c0_75 = arith.constant 0 : index
    %70 = vector.load %arg3[%c0_74, %c0_75] : memref<16x144xbf16, #tpu.memory_space<vmem>>, vector<16x144xbf16>
    %c0_76 = arith.constant 0 : index
    %c0_77 = arith.constant 0 : index
    %71 = vector.load %arg6[%c0_76, %c0_77] : memref<144x648xbf16, #tpu.memory_space<vmem>>, vector<144x648xbf16>
    %cst_78 = arith.constant dense<0.000000e+00> : vector<16x648xf32>
    %72 = tpu.matmul %70, %71, %cst_78 {dimension_numbers = #tpu.dot_dimension_numbers<[1], [0], [0], [1], [0, 0, 1, 1], [], []>} : vector<16x144xbf16>, vector<144x648xbf16>, vector<16x648xf32> -> vector<16x648xf32>
    %73 = vector.broadcast %0 : vector<1x648xf32> to vector<16x648xf32>
    %74 = arith.mulf %72, %73 : vector<16x648xf32>
    %cst_79 = arith.constant dense<0.000000e+00> : vector<16xf32>
    %75 = vector.multi_reduction <add>, %74, %cst_79 [1] : vector<16x648xf32> to vector<16xf32>
    %76 = vector.shape_cast %75 : vector<16xf32> to vector<16x1xf32>
    %77 = arith.mulf %72, %74 : vector<16x648xf32>
    %cst_80 = arith.constant dense<0.000000e+00> : vector<16xf32>
    %78 = vector.multi_reduction <add>, %77, %cst_80 [1] : vector<16x648xf32> to vector<16xf32>
    %79 = vector.shape_cast %78 : vector<16xf32> to vector<16x1xf32>
    %cst_81 = arith.constant 0.001953125 : f32
    %80 = vector.broadcast %cst_81 : f32 to vector<16x1xf32>
    %81 = arith.mulf %76, %80 : vector<16x1xf32>
    %cst_82 = arith.constant 0.001953125 : f32
    %82 = vector.broadcast %cst_82 : f32 to vector<16x1xf32>
    %83 = arith.mulf %79, %82 : vector<16x1xf32>
    %84 = arith.mulf %81, %81 : vector<16x1xf32>
    %85 = arith.subf %83, %84 : vector<16x1xf32>
    %cst_83 = arith.constant 0.000000e+00 : f32
    %86 = vector.broadcast %cst_83 : f32 to vector<16x1xf32>
    %87 = arith.maximumf %85, %86 : vector<16x1xf32>
    %88 = vector.broadcast %81 : vector<16x1xf32> to vector<16x648xf32>
    %89 = arith.subf %72, %88 : vector<16x648xf32>
    %cst_84 = arith.constant 9.99999974E-6 : f32
    %90 = vector.broadcast %cst_84 : f32 to vector<16x1xf32>
    %91 = arith.addf %87, %90 : vector<16x1xf32>
    %92 = math.rsqrt %91 : vector<16x1xf32>
    %93 = vector.broadcast %92 : vector<16x1xf32> to vector<16x648xf32>
    %94 = arith.mulf %89, %93 : vector<16x648xf32>
    %c0_85 = arith.constant 0 : index
    %c0_86 = arith.constant 0 : index
    %95 = vector.load %arg5[%c0_85, %c0_86] : memref<16x648xf32, #tpu.memory_space<vmem>>, vector<16x648xf32>
    tpu.vector_store %arg5[%c0_85, %c0_86], %94 {strides = array<i32>} : memref<16x648xf32, #tpu.memory_space<vmem>>, vector<16x648xf32>,
    return
  }
  func.func @transform_0(%arg0: i32) -> (i32, i32) {
    %c0_i32 = arith.constant 0 : i32
    %c0_i32_0 = arith.constant 0 : i32
    %c0_i32_1 = arith.constant 0 : i32
    return %c0_i32, %c0_i32_0 : i32, i32
  }
  func.func @transform_1(%arg0: i32) -> (i32, i32) {
    %c0_i32 = arith.constant 0 : i32
    %c0_i32_0 = arith.constant 0 : i32
    %c0_i32_1 = arith.constant 0 : i32
    return %c0_i32, %c0_i32_0 : i32, i32
  }
  func.func @transform_2(%arg0: i32) -> (i32, i32) {
    %c0_i32 = arith.constant 0 : i32
    %c0_i32_0 = arith.constant 0 : i32
    %c0_i32_1 = arith.constant 0 : i32
    return %c0_i32, %c0_i32_0 : i32, i32
  }
  func.func @transform_3(%arg0: i32) -> (i32, i32) {
    %c0_i32 = arith.constant 0 : i32
    %c0_i32_0 = arith.constant 0 : i32
    %c0_i32_1 = arith.constant 0 : i32
    return %c0_i32, %c0_i32_0 : i32, i32
  }
  func.func @transform_4(%arg0: i32) -> (i32, i32) {
    %c0_i32 = arith.constant 0 : i32
    %c0_i32_0 = arith.constant 0 : i32
    %c0_i32_1 = arith.constant 0 : i32
    return %c0_i32, %c0_i32_0 : i32, i32
  }
}

</mosaic_0001>

<bundles_post_ra>
// kernel: tpu_custom_call.1
= control target key start
LH: loop header
LB: loop body
LE: loop exit
PB: predicated region body
PF: predicated region fallthrough
CT: control target
= control target key end

     0   :  { %9 = vsyncpa [#allocation5], 0  ;;  %s3830_s0 = inlined_call_operand.hbm [shape: bf16[16,904], index: 0, kind: input, shape index: {}]   ;;  %s3831_s1 = inlined_call_operand.hbm [shape: bf16[16,144], index: 1, kind: input, shape index: {}]   ;;  %s3832_s2 = inlined_call_operand.hbm [shape: bf16[16,144], index: 2, kind: input, shape index: {}]   ;;  %s3833_s3 = inlined_call_operand.hbm [shape: f32[1,648], index: 3, kind: input, shape index: {}]   ;;  %s3834_s4 = inlined_call_operand.hbm [shape: f32[16,648], index: 4, kind: output, shape index: {}]  }
   0x1   :  { %10 = vsyncpa [#allocation8], 0 }
   0x2   :  { %11 = vsyncpa [#allocation11], 0  ;;  %s30_s17 = sshll.u32 %s3831_s1, 4  ;;  %s31_s17 = int_to_ptr.hbm [resolvable:$true] %s30_s17 }
   0x3   :  { %12 = vsyncpa [#allocation6], 0  ;;  %s3013_s18 = smov [#allocation7]   ;;  %s17_s22 = sshll.u32 %s3830_s0, 4  ;;  %s18_s22 = int_to_ptr.hbm [resolvable:$true] %s17_s22 }
   0x4   :  { %s32_s19 = sshll.u32 %s3013_s18, 4  ;;  %s3014_s23 = smov 128   ;;  %s33_s19 = int_to_ptr.vmem [resolvable:$true] %s32_s19 }
   0x5   :  { %s3015_s24 = smov 8   ;;  %s3016_s25 = smov [#allocation4]  }
   0x6   :  { %38 = dma.hbm_to_vmem [thread:$0]  %s31_s17, 256, %s33_s19, [#allocation8], %s3014_s23, %s3014_s23, %s3015_s24  }
   0x7   :  { %s19_s26 = sshll.u32 %s3016_s25, 4  ;;  %s3017_s27 = smov 512   ;;  %s20_s26 = int_to_ptr.vmem [resolvable:$true] %s19_s26 }
   0x8   :  { %s3018_s28 = smov 32   ;;  %s43_s30 = sshll.u32 %s3832_s2, 4  ;;  %s44_s30 = int_to_ptr.hbm [resolvable:$true] %s43_s30 }
   0x9   :  { %25 = dma.hbm_to_vmem [thread:$0]  %s18_s22, 1024, %s20_s26, [#allocation5], %s3017_s27, %s3017_s27, %s3018_s28  }
   0xa   :  { %s3019_s5 = smov [#allocation9]   ;;  %s57_s8 = sshll.u32 %s3833_s3, 4  ;;  %s58_s8 = int_to_ptr.hbm [resolvable:$true] %s57_s8 }
   0xb   :  { %s45_s6 = sshll.u32 %s3019_s5, 4  ;;  %s3020_s9 = smov [#allocation10]   ;;  %s46_s6 = int_to_ptr.vmem [resolvable:$true] %s45_s6 }
   0xc   :  { %51 = dma.hbm_to_vmem [thread:$0]  %s44_s30, 256, %s46_s6, [#allocation8], %s3014_s23, %s3014_s23, %s3015_s24  }
   0xd   :  { %s59_s10 = sshll.u32 %s3020_s9, 4  ;;  %s60_s10 = int_to_ptr.vmem [resolvable:$true] %s59_s10 }
   0xe   :  { %62 = dma.hbm_to_vmem [thread:$0]  %s58_s8, 96, %s60_s10, [#allocation11]  }
   0xf   :  { %3005 = dma.done.wait [#allocation5], 1024  }
  0x10   :  { %3006 = vsyncadd [#allocation5], 4294966272 }
  0x11   :  { %3007 = dma.done.wait [#allocation8], 512  }
  0x12   :  { %3008 = vsyncadd [#allocation8], 4294966784 }
  0x13   :  { %3009 = dma.done.wait [#allocation11], 96  }
  0x14   :  { %3010 = vsyncadd [#allocation11], 4294967200  ;;  %v431_v0 = vld [vmem:[#allocation4 + $0x2c] sm:$0xff]  ;;  %v3070_v1 = vld [vmem:[#allocation4 + $0x14] sm:$0xff]  ;;  %s3021_s2 = smov 110   ;;  %s3022_s3 = smov 111  }
  0x15   :  { %v427_v2 = vld [vmem:[#allocation4 + $0x4] sm:$0xff]  ;;  %447 = vrot.lane.b32.xlu2 %v431_v0, %s3021_s2  ;;  %443 = vrot.lane.b32.xlu1 %v3070_v1, %s3021_s2  ;;  %v428_v4 = vld [vmem:[#allocation4 + $0xc] sm:$0xff]  ;;  %319 = vst [vmem:[#allocation2 + $0xe0] sm:$0xff] %v431_v0  ;;  %v3076_v5 = vld [vmem:[#allocation4 + $0x34] sm:$0xff]  ;;  %s3023_s11 = smov 127   ;;  %s3024_s12 = smov 1  }
  0x16   :  { %v430_v3 = vld [vmem:[#allocation4 + $0x24] sm:$0xff]  ;;  %315 = vst [vmem:[#allocation2 + $0xc0] sm:$0xff] %v427_v2  ;;  %439 = vrot.lane.b32.xlu0 %v427_v2, %s3021_s2  ;;  %v246_v6 = vld [vmem:[#allocation4 + $0x10] sm:$0xff]  ;;  %s3025_s13 = smov 109   ;;  %vm111_vm0 = vcmask 1043456   ;;  %vm132_vm1 = vcmask 64516  }
  0x17   :  { %318 = vst [vmem:[#allocation2 + $0xd8] sm:$0xff] %v430_v3  ;;  %v245_v7 = vld [vmem:[#allocation4 + $0x8] sm:$0xff]  ;;  %v244_v8 = vld [vmem:[#allocation4] sm:$0xff]  ;;  %v250_v9 = vld [vmem:[#allocation4 + $0x30] sm:$0xff]  ;;  %s3026_s14 = smov 17   ;;  %s3027_s15 = smov 18  }
  0x18   :  { %316 = vst [vmem:[#allocation2 + $0xc8] sm:$0xff] %v428_v4  ;;  %v249_v10 = vld [vmem:[#allocation4 + $0x28] sm:$0xff]  ;;  %v248_v11 = vld [vmem:[#allocation4 + $0x20] sm:$0xff]  ;;  %vm3108_vm2 = vmor %vm132_vm1, %vm111_vm0  ;;  %vm458_vm3 = vcmask 900096   ;;  %s3028_s16 = smov 19   ;;  %vm405_vm4 = vcmask 908288  }
  0x19   :  { %317 = vst.msk [vmem:[#allocation2 + $0xd0] sm:$0xff] %vm3108_vm2, %v3070_v1  ;;  %vm352_vm5 = vcmask 1039360   ;;  %v251_v39 = vld [vmem:[#allocation4 + $0x38] sm:$0xf]  ;;  %vm285_vm6 = vcmask 7168   ;;  %vm511_vm7 = vcmask 891904  }
  0x1a   :  { %320 = vst.msk [vmem:[#allocation2 + $0xe8] sm:$0xff] %vm3108_vm2, %v3076_v5  ;;  %v247_v43 = vld [vmem:[#allocation4 + $0x18] sm:$0xf]  ;;  %vm222_vm8 = vcmask 138240   ;;  %vm868_vm9 = vcmask 130048   ;;  %vm169_vm10 = vcmask 146432  }
  0x1b   :  { %vm113_vm11 = vcmask 154624   ;;  %vm1069_vm12 = vcmask 64512   ;;  %s3030_s17 = smov [#allocation12]   ;;  %s2270_s21 = sshll.u32 %s3834_s4, 4  ;;  %s2271_s21 = int_to_ptr.hbm [resolvable:$true] %s2270_s21 }
  0x1c   :  { %s2268_s18 = sshll.u32 %s3030_s17, 4  ;;  %s3031_s22 = smov 768   ;;  %s2269_s18 = int_to_ptr.vmem [resolvable:$true] %s2268_s18 }
  0x1d   :  { %449 = vrot.lane.b32.xlu2 %v3076_v5, %s3021_s2  ;;  %445 = vrot.lane.b32.xlu1 %v430_v3, %s3021_s2  ;;  %s3032_s23 = smov 48  }
  0x1e   :  { %441 = vrot.lane.b32.xlu0 %v428_v4, %s3021_s2 }
  0x25   :  { %390 = vrot.lane.b32.xlu2 %v3070_v1, %s3022_s3  ;;  %388 = vrot.lane.b32.xlu1 %v428_v4, %s3022_s3 }
  0x26   :  { %386 = vrot.lane.b32.xlu0 %v427_v2, %s3022_s3 }
  0x2d   :  { %396 = vrot.lane.b32.xlu2 %v3076_v5, %s3022_s3  ;;  %394 = vrot.lane.b32.xlu1 %v431_v0, %s3022_s3 }
  0x2e   :  { %392 = vrot.lane.b32.xlu0 %v430_v3, %s3022_s3 }
  0x35   :  { %337 = vrot.lane.b32.xlu2 %v3070_v1, %s3023_s11  ;;  %335 = vrot.lane.b32.xlu1 %v428_v4, %s3023_s11 }
  0x36   :  { %333 = vrot.lane.b32.xlu0 %v427_v2, %s3023_s11 }
  0x3d   :  { %343 = vrot.lane.b32.xlu2 %v3076_v5, %s3023_s11  ;;  %341 = vrot.lane.b32.xlu1 %v431_v0, %s3023_s11 }
  0x3e   :  { %339 = vrot.lane.b32.xlu0 %v430_v3, %s3023_s11 }
  0x45   :  { %264 = vrot.lane.b32.xlu2 %v246_v6, %s3024_s12  ;;  %262 = vrot.lane.b32.xlu1 %v245_v7, %s3024_s12 }
  0x46   :  { %260 = vrot.lane.b32.xlu0 %v244_v8, %s3024_s12 }
  0x4d   :  { %272 = vrot.lane.b32.xlu2 %v250_v9, %s3024_s12  ;;  %270 = vrot.lane.b32.xlu1 %v249_v10, %s3024_s12 }
  0x4e   :  { %268 = vrot.lane.b32.xlu0 %v248_v11, %s3024_s12 }
  0x55   :  { %498 = vrot.lane.b32.xlu2 %v430_v3, %s3025_s13  ;;  %494 = vrot.lane.b32.xlu1 %v428_v4, %s3025_s13 }
  0x56   :  { %492 = vrot.lane.b32.xlu0 %v427_v2, %s3025_s13 }
  0x5d   :  { %205 = vrot.lane.b32.xlu2 %v245_v7, %s3026_s14  ;;  %203 = vrot.lane.b32.xlu1 %v244_v8, %s3026_s14 }
  0x5e   :  { %500 = vrot.lane.b32.xlu0 %v431_v0, %s3025_s13 }
  0x65   :  { %211 = vrot.lane.b32.xlu2 %v249_v10, %s3026_s14  ;;  %209 = vrot.lane.b32.xlu1 %v248_v11, %s3026_s14 }
  0x66   :  { %207 = vrot.lane.b32.xlu0 %v246_v6, %s3026_s14 }
  0x6d   :  { %152 = vrot.lane.b32.xlu2 %v245_v7, %s3027_s15  ;;  %150 = vrot.lane.b32.xlu1 %v244_v8, %s3027_s15 }
  0x6e   :  { %213 = vrot.lane.b32.xlu0 %v250_v9, %s3026_s14 }
  0x6f   :  { %v448_v13 = vpop.permute.xlu2 %447 }
  0x70   :  { %v455_v14 = vrot.slane %v448_v13, 4 }
  0x75   :  { %158 = vrot.lane.b32.xlu2 %v249_v10, %s3027_s15  ;;  %156 = vrot.lane.b32.xlu1 %v248_v11, %s3027_s15 }
  0x76   :  { %154 = vrot.lane.b32.xlu0 %v246_v6, %s3027_s15 }
  0x77   :  { %v450_v15 = vpop.permute.xlu2 %449 }
  0x78   :  { %v456_v16 = vrot.slane %v450_v15, 4 }
  0x7a   :  { %v465_v17 = vsel %vm111_vm0, %v455_v14, %v456_v16  ;;  %v467_v18 = vsel %vm458_vm3, %v450_v15, %v456_v16 }
  0x7b   :  { %v466_v19 = vsel %vm458_vm3, %v448_v13, %v465_v17  ;;  %479 = vst.msk [vmem:[#allocation2 + $0x178] sm:$0xff] %vm3108_vm2, %v467_v18 }
  0x7c   :  { %478 = vst [vmem:[#allocation2 + $0x170] sm:$0xff] %v466_v19 }
  0x7d   :  { %95 = vrot.lane.b32.xlu2 %v245_v7, %s3028_s16  ;;  %93 = vrot.lane.b32.xlu1 %v244_v8, %s3028_s16 }
  0x7e   :  { %160 = vrot.lane.b32.xlu0 %v250_v9, %s3027_s15 }
  0x7f   :  { %v391_v20 = vpop.permute.xlu2 %390 }
  0x80   :  { %v400_v21 = vrot.slane %v391_v20, 4 }
  0x82   :  { %v409_v22 = vsel %vm405_vm4, %v391_v20, %v400_v21 }
  0x83   :  { %423 = vst.msk [vmem:[#allocation2 + $0x130] sm:$0xff] %vm3108_vm2, %v409_v22  ;;  %v2793_v61 = vld [vmem:[#allocation2 + $0x16c] sm:$0xf0] }
  0x85   :  { %101 = vrot.lane.b32.xlu2 %v249_v10, %s3028_s16  ;;  %99 = vrot.lane.b32.xlu1 %v248_v11, %s3028_s16 }
  0x86   :  { %97 = vrot.lane.b32.xlu0 %v246_v6, %s3028_s16 }
  0x87   :  { %v444_v23 = vpop.permute.xlu1 %443  ;;  %v3144_v24 = vpop.permute.xlu2 %396 }
  0x88   :  { %v453_v25 = vrot.slane %v444_v23, 4  ;;  %v440_v26 = vpop.permute.xlu0 %439  ;;  %v403_v27 = vrot.slane %v3144_v24, 4 }
  0x89   :  { %v451_v35 = vrot.slane %v440_v26, 4 }
  0x8a   :  { %v462_v28 = vsel %vm458_vm3, %v444_v23, %v453_v25  ;;  %v414_v29 = vsel %vm405_vm4, %v3144_v24, %v403_v27 }
  0x8b   :  { %476 = vst.msk [vmem:[#allocation2 + $0x160] sm:$0xff] %vm3108_vm2, %v462_v28 }
  0x8c   :  { %426 = vst.msk [vmem:[#allocation2 + $0x148] sm:$0xff] %vm3108_vm2, %v414_v29 }
  0x8d   :  { %502 = vrot.lane.b32.xlu2 %v3076_v5, %s3025_s13  ;;  %496 = vrot.lane.b32.xlu1 %v3070_v1, %s3025_s13 }
  0x8e   :  { %103 = vrot.lane.b32.xlu0 %v250_v9, %s3028_s16 }
  0x8f   :  { %v446_v30 = vpop.permute.xlu1 %445  ;;  %v338_v31 = vpop.permute.xlu2 %337 }
  0x90   :  { %v454_v32 = vrot.slane %v446_v30, 4  ;;  %v442_v33 = vpop.permute.xlu0 %441  ;;  %v347_v34 = vrot.slane %v338_v31, 4 }
  0x91   :  { %v452_v36 = vrot.slane %v442_v33, 4 }
  0x92   :  { %v463_v37 = vsel %vm111_vm0, %v454_v32, %v455_v14  ;;  %v356_v38 = vsel %vm352_vm5, %v338_v31, %v347_v34 }
  0x93   :  { %v464_v40 = vsel %vm458_vm3, %v446_v30, %v463_v37  ;;  %v457_v41 = vsel %vm111_vm0, %v451_v35, %v452_v36  ;;  %v460_v42 = vsel %vm111_vm0, %v452_v36, %v453_v25  ;;  %370 = vst.msk [vmem:[#allocation2 + $0x100] sm:$0xff] %vm3108_vm2, %v356_v38 }
  0x94   :  { %477 = vst [vmem:[#allocation2 + $0x168] sm:$0xff] %v464_v40  ;;  %v459_v44 = vsel %vm458_vm3, %v440_v26, %v457_v41  ;;  %v461_v45 = vsel %vm458_vm3, %v442_v33, %v460_v42  ;;  %v2391_v40 = vld [vmem:[#allocation2 + $0xc0] sm:$0xf]  ;;  %v2774_v41 = vld [vmem:[#allocation2 + $0xd4] sm:$0xf0] }
  0x95   :  { %474 = vst [vmem:[#allocation2 + $0x150] sm:$0xff] %v459_v44  ;;  %274 = vrot.lane.b32.xlu1 %v251_v39, %s3024_s12  ;;  %v2399_v42 = vld [vmem:[#allocation2 + $0xc8] sm:$0xf] }
  0x96   :  { %475 = vst [vmem:[#allocation2 + $0x158] sm:$0xff] %v461_v45  ;;  %266 = vrot.lane.b32.xlu0 %v247_v43, %s3024_s12 }
  0x97   :  { %v389_v46 = vpop.permute.xlu1 %388  ;;  %v344_v47 = vpop.permute.xlu2 %343 }
  0x98   :  { %v399_v48 = vrot.slane %v389_v46, 4  ;;  %v387_v49 = vpop.permute.xlu0 %386  ;;  %v350_v50 = vrot.slane %v344_v47, 4 }
  0x99   :  { %v398_v51 = vrot.slane %v387_v49, 4 }
  0x9a   :  { %v407_v52 = vsel %vm111_vm0, %v399_v48, %v400_v21  ;;  %v361_v53 = vsel %vm352_vm5, %v344_v47, %v350_v50  ;;  %v2775_v47 = vld [vmem:[#allocation2 + $0xdc] sm:$0xf0] }
  0x9b   :  { %v408_v54 = vsel %vm405_vm4, %v389_v46, %v407_v52  ;;  %v404_v55 = vsel %vm111_vm0, %v398_v51, %v399_v48  ;;  %373 = vst.msk [vmem:[#allocation2 + $0x118] sm:$0xff] %vm3108_vm2, %v361_v53  ;;  %v2792_v56 = vld [vmem:[#allocation2 + $0x164] sm:$0xf0] }
  0x9c   :  { %422 = vst [vmem:[#allocation2 + $0x128] sm:$0xff] %v408_v54  ;;  %v406_v57 = vsel %vm405_vm4, %v387_v49, %v404_v55  ;;  %v2463_v58 = vld [vmem:[#allocation2 + $0x150] sm:$0xf]  ;;  %v2400_v54 = vor.u32 %v2775_v47, %v2399_v42 }
  0x9d   :  { %421 = vst [vmem:[#allocation2 + $0x120] sm:$0xff] %v406_v57  ;;  %v2464_v59 = vor.u32 %v2792_v56, %v2463_v58  ;;  %v2471_v60 = vld [vmem:[#allocation2 + $0x158] sm:$0xf]  ;;  %v2392_v57 = vor.u32 %v2774_v41, %v2391_v40  ;;  %v2465_v40 = vld [vmem:[#allocation2 + $0x168] sm:$0xf0] }
  0x9e   :  { %v2472_v62 = vor.u32 %v2793_v61, %v2471_v60 }
  0x9f   :  { %872 = vmatpush.bf16.msra.mxu0 %v2464_v59  ;;  %v395_v63 = vpop.permute.xlu1 %394  ;;  %v3177_v0 = vpop.permute.xlu2 %264 }
  0xa0   :  { %928 = vmatpush.bf16.msra.mxu1 %v2472_v62  ;;  %v402_v1 = vrot.slane %v395_v63, 4  ;;  %v393_v2 = vpop.permute.xlu0 %392  ;;  %v278_v33 = vrot.slane %v3177_v0, 4 }
  0xa1   :  { %v401_v3 = vrot.slane %v393_v2, 4 }
  0xa2   :  { %v412_v4 = vsel %vm111_vm0, %v402_v1, %v403_v27 }
  0xa3   :  { %v413_v5 = vsel %vm405_vm4, %v395_v63, %v412_v4  ;;  %v410_v6 = vsel %vm111_vm0, %v401_v3, %v402_v1  ;;  %v2447_v17 = vld [vmem:[#allocation2 + $0x128] sm:$0xf] }
  0xa4   :  { %425 = vst [vmem:[#allocation2 + $0x140] sm:$0xff] %v413_v5  ;;  %v411_v7 = vsel %vm405_vm4, %v393_v2, %v410_v6  ;;  %v2439_v20 = vld [vmem:[#allocation2 + $0x120] sm:$0xf] }
  0xa5   :  { %424 = vst [vmem:[#allocation2 + $0x138] sm:$0xff] %v411_v7 }
  0xa7   :  { %v336_v8 = vpop.permute.xlu1 %335  ;;  %v3183_v9 = vpop.permute.xlu2 %272 }
  0xa8   :  { %v346_v10 = vrot.slane %v336_v8, 4  ;;  %v334_v11 = vpop.permute.xlu0 %333  ;;  %v282_v53 = vrot.slane %v3183_v9, 4 }
  0xa9   :  { %v345_v13 = vrot.slane %v334_v11, 4 }
  0xaa   :  { %v354_v14 = vsel %vm111_vm0, %v346_v10, %v347_v34 }
  0xab   :  { %v355_v15 = vsel %vm352_vm5, %v336_v8, %v354_v14  ;;  %v351_v16 = vsel %vm111_vm0, %v345_v13, %v346_v10  ;;  %v2787_v18 = vld [vmem:[#allocation2 + $0x13c] sm:$0xf0] }
  0xac   :  { %369 = vst [vmem:[#allocation2 + $0xf8] sm:$0xff] %v355_v15  ;;  %v353_v19 = vsel %vm352_vm5, %v334_v11, %v351_v16  ;;  %v2786_v21 = vld [vmem:[#allocation2 + $0x134] sm:$0xf0]  ;;  %v2448_v22 = vor.u32 %v2787_v18, %v2447_v17 }
  0xad   :  { %368 = vst [vmem:[#allocation2 + $0xf0] sm:$0xff] %v353_v19  ;;  %v2440_v23 = vor.u32 %v2786_v21, %v2439_v20 }
  0xae   :  { %929 = vmatpush.bf16.msra.mxu1 %v2448_v22 }
  0xaf   :  { %873 = vmatpush.bf16.msra.mxu0 %v2440_v23  ;;  %v342_v24 = vpop.permute.xlu1 %341  ;;  %v3189_v25 = vpop.permute.xlu2 %498 }
  0xb0   :  { %v349_v26 = vrot.slane %v342_v24, 4  ;;  %v340_v27 = vpop.permute.xlu0 %339  ;;  %v507_v22 = vrot.slane %v3189_v25, 4 }
  0xb1   :  { %v348_v28 = vrot.slane %v340_v27, 4 }
  0xb2   :  { %v359_v29 = vsel %vm111_vm0, %v349_v26, %v350_v50 }
  0xb3   :  { %v360_v30 = vsel %vm352_vm5, %v342_v24, %v359_v29  ;;  %v357_v31 = vsel %vm111_vm0, %v348_v28, %v349_v26  ;;  %v2423_v45 = vld [vmem:[#allocation2 + $0xf8] sm:$0xf] }
  0xb4   :  { %372 = vst [vmem:[#allocation2 + $0x110] sm:$0xff] %v360_v30  ;;  %v358_v32 = vsel %vm352_vm5, %v340_v27, %v357_v31  ;;  %v2415_v49 = vld [vmem:[#allocation2 + $0xf0] sm:$0xf] }
  0xb5   :  { %371 = vst [vmem:[#allocation2 + $0x108] sm:$0xff] %v358_v32 }
  0xb7   :  { %v263_v34 = vpop.permute.xlu1 %262  ;;  %v3196_v35 = vpop.permute.xlu2 %205 }
  0xb8   :  { %v277_v36 = vrot.slane %v263_v34, 4  ;;  %v261_v37 = vpop.permute.xlu0 %260  ;;  %v216_v17 = vrot.slane %v3196_v35, 4 }
  0xb9   :  { %v276_v38 = vrot.slane %v261_v37, 4 }
  0xba   :  { %v287_v39 = vsel %vm111_vm0, %v277_v36, %v278_v33 }
  0xbb   :  { %v288_v43 = vsel %vm285_vm6, %v263_v34, %v287_v39  ;;  %v284_v44 = vsel %vm111_vm0, %v276_v38, %v277_v36  ;;  %v2781_v46 = vld [vmem:[#allocation2 + $0x10c] sm:$0xf0]  ;;  %v2789_v39 = vld [vmem:[#allocation2 + $0x154] sm:$0xf] }
  0xbc   :  { %304 = vst [vmem:[#allocation2 + $0x98] sm:$0xff] %v288_v43  ;;  %v286_v48 = vsel %vm285_vm6, %v261_v37, %v284_v44  ;;  %v2780_v50 = vld [vmem:[#allocation2 + $0x104] sm:$0xf0]  ;;  %v2424_v51 = vor.u32 %v2781_v46, %v2423_v45  ;;  %v2745_v44 = vld [vmem:[#allocation7 + $0x4] sm:$0xf] }
  0xbd   :  { %303 = vst [vmem:[#allocation2 + $0x90] sm:$0xff] %v286_v48  ;;  %v2416_v52 = vor.u32 %v2780_v50, %v2415_v49  ;;  %v2289_v45 = vld [vmem:[#allocation7 + $0x8] sm:$0xf0] }
  0xbe   :  { %930 = vmatpush.bf16.msra.mxu1 %v2424_v51 }
  0xbf   :  { %874 = vmatpush.bf16.msra.mxu0 %v2416_v52  ;;  %v271_v55 = vpop.permute.xlu1 %270  ;;  %v3205_v56 = vpop.permute.xlu2 %211  ;;  %v2468_v52 = vor.u32 %v2789_v39, %v2465_v40 }
  0xc0   :  { %v281_v58 = vrot.slane %v271_v55, 4  ;;  %v269_v59 = vpop.permute.xlu0 %268  ;;  %v219_v29 = vrot.slane %v3205_v56, 4 }
  0xc1   :  { %v280_v60 = vrot.slane %v269_v59, 4 }
  0xc2   :  { %v293_v61 = vsel %vm111_vm0, %v281_v58, %v282_v53  ;;  %931 = vmatpush.bf16.msra.mxu1 %v2400_v54  ;;  %v3248_v54 = vor.u32 %v2745_v44, %v2289_v45 }
  0xc3   :  { %v294_v62 = vsel %vm285_vm6, %v271_v55, %v293_v61  ;;  %v291_v63 = vsel %vm111_vm0, %v280_v60, %v281_v58  ;;  %875 = vmatpush.bf16.msra.mxu0 %v2392_v57  ;;  %v2375_v8 = vld [vmem:[#allocation2 + $0x98] sm:$0xf]  ;;  %v2783_v61 = vld [vmem:[#allocation2 + $0x124] sm:$0xf] }
  0xc4   :  { %307 = vst [vmem:[#allocation2 + $0xb0] sm:$0xff] %v294_v62  ;;  %v292_v1 = vsel %vm285_vm6, %v269_v59, %v291_v63  ;;  %v2367_v13 = vld [vmem:[#allocation2 + $0x90] sm:$0xf] }
  0xc5   :  { %306 = vst [vmem:[#allocation2 + $0xa8] sm:$0xff] %v292_v1 }
  0xc7   :  { %v3213_v2 = vpop.permute.xlu1 %494  ;;  %v3215_v3 = vpop.permute.xlu2 %152 }
  0xc8   :  { %v505_v4 = vrot.slane %v3213_v2, 4  ;;  %v493_v5 = vpop.permute.xlu0 %492  ;;  %v163_v51 = vrot.slane %v3215_v3, 4 }
  0xc9   :  { %v504_v6 = vrot.slane %v493_v5, 4 }
  0xcb   :  { %v510_v7 = vsel %vm111_vm0, %v504_v6, %v505_v4  ;;  %v2769_v10 = vld [vmem:[#allocation2 + $0xac] sm:$0xf0] }
  0xcc   :  { %v512_v11 = vsel %vm511_vm7, %v493_v5, %v510_v7  ;;  %v2768_v14 = vld [vmem:[#allocation2 + $0xa4] sm:$0xf0]  ;;  %v2376_v15 = vor.u32 %v2769_v10, %v2375_v8  ;;  %v2777_v7 = vld [vmem:[#allocation2 + $0xf4] sm:$0xf]  ;;  %v2417_v8 = vld [vmem:[#allocation2 + $0x108] sm:$0xf0] }
  0xcd   :  { %527 = vst [vmem:[#allocation2 + $0x180] sm:$0xff] %v512_v11  ;;  %v2368_v16 = vor.u32 %v2768_v14, %v2367_v13  ;;  %v2771_v11 = vld [vmem:[#allocation2 + $0xc4] sm:$0xf]  ;;  %v2393_v13 = vld [vmem:[#allocation2 + $0xd8] sm:$0xf0] }
  0xce   :  { %932 = vmatpush.bf16.msra.mxu1 %v2376_v15 }
  0xcf   :  { %876 = vmatpush.bf16.msra.mxu0 %v2368_v16  ;;  %v204_v18 = vpop.permute.xlu1 %203  ;;  %v3223_v19 = vpop.permute.xlu2 %158 }
  0xd0   :  { %v3225_v20 = vpop.permute.xlu0 %500  ;;  %v215_v21 = vrot.slane %v204_v18, 4  ;;  %v166_v16 = vrot.slane %v3223_v19, 4 }
  0xd1   :  { %v508_v23 = vrot.slane %v3225_v20, 4 }
  0xd2   :  { %v221_v24 = vsel %vm111_vm0, %v215_v21, %v216_v17 }
  0xd3   :  { %v516_v26 = vsel %vm111_vm0, %v507_v22, %v508_v23  ;;  %v223_v27 = vsel %vm222_vm8, %v204_v18, %v221_v24  ;;  %v2420_v18 = vor.u32 %v2777_v7, %v2417_v8 }
  0xd4   :  { %v517_v28 = vsel %vm511_vm7, %v3189_v25, %v516_v26  ;;  %238 = vst [vmem:[#allocation2 + $0x60] sm:$0xff] %v223_v27  ;;  %v2487_v38 = vld [vmem:[#allocation2 + $0x180] sm:$0xf]  ;;  %v2795_v43 = vld [vmem:[#allocation2 + $0x184] sm:$0xf]  ;;  %v2396_v27 = vor.u32 %v2771_v11, %v2393_v13 }
  0xd5   :  { %530 = vst [vmem:[#allocation2 + $0x198] sm:$0xff] %v517_v28 }
  0xd7   :  { %v210_v30 = vpop.permute.xlu1 %209  ;;  %v3237_v31 = vpop.permute.xlu2 %95 }
  0xd8   :  { %v208_v32 = vpop.permute.xlu0 %207  ;;  %v218_v34 = vrot.slane %v210_v30, 4 }
  0xd9   :  { %v217_v36 = vrot.slane %v208_v32, 4 }
  0xda   :  { %v227_v37 = vsel %vm111_vm0, %v218_v34, %v219_v29 }
  0xdb   :  { %v224_v41 = vsel %vm111_vm0, %v216_v17, %v217_v36  ;;  %v226_v42 = vsel %vm222_vm8, %v208_v32, %v217_v36  ;;  %v228_v25 = vsel %vm222_vm8, %v210_v30, %v227_v37  ;;  %v2343_v14 = vld [vmem:[#allocation2 + $0x60] sm:$0xf] }
  0xdc   :  { %v225_v46 = vsel %vm222_vm8, %v3196_v35, %v224_v41  ;;  %240 = vst.msk [vmem:[#allocation2 + $0x70] sm:$0xff] %vm3108_vm2, %v226_v42  ;;  %v2798_v47 = vld [vmem:[#allocation2 + $0x194] sm:$0xf0]  ;;  %v2489_v48 = vld [vmem:[#allocation2 + $0x198] sm:$0xf0] }
  0xdd   :  { %239 = vst [vmem:[#allocation2 + $0x68] sm:$0xff] %v225_v46  ;;  %v2488_v49 = vor.u32 %v2798_v47, %v2487_v38  ;;  %v2492_v50 = vor.u32 %v2795_v43, %v2489_v48  ;;  %v2441_v35 = vld [vmem:[#allocation2 + $0x138] sm:$0xf0]  ;;  %v2369_v38 = vld [vmem:[#allocation2 + $0xa8] sm:$0xf0]  ;;  %v106_v43 = vrot.slane %v3237_v31, 4 }
  0xde   :  { %241 = vst [vmem:[#allocation2 + $0x78] sm:$0xff] %v228_v25  ;;  %v2444_v63 = vor.u32 %v2783_v61, %v2441_v35  ;;  %v2765_v25 = vld [vmem:[#allocation2 + $0x94] sm:$0xf] }
  0xdf   :  { %893 = vmatpush.bf16.msra.mxu2 %v2488_v49  ;;  %921 = vmatpush.bf16.msra.mxu3 %v2492_v50  ;;  %v151_v55 = vpop.permute.xlu1 %150  ;;  %v3250_v57 = vpop.permute.xlu2 %101  ;;  %v2372_v44 = vor.u32 %v2765_v25, %v2369_v38 }
  0xe0   :  { %v214_v58 = vpop.permute.xlu0 %213  ;;  %v162_v59 = vrot.slane %v151_v55, 4 }
  0xe1   :  { %v220_v60 = vrot.slane %v214_v58, 4 }
  0xe2   :  { %v168_v62 = vsel %vm111_vm0, %v162_v59, %v163_v51  ;;  %2509 = vmatmul.msk.bf16.vlgmr.msra.gmra.mxu2 %vm868_vm9, %v3248_v54  ;;  %2510 = vmatmul.msk.bf16.vlgmr.msra.gmra.mxu3 %vm868_vm9, %v3248_v54 }
  0xe3   :  { %900 = vmatpush.bf16.msrb.mxu2 %v2468_v52  ;;  %v229_v1 = vsel %vm111_vm0, %v219_v29, %v220_v60  ;;  %v231_v5 = vsel %vm222_vm8, %v214_v58, %v220_v60  ;;  %v170_v6 = vsel %vm169_vm10, %v151_v55, %v168_v62  ;;  %v109_v62 = vrot.slane %v3250_v57, 4 }
  0xe4   :  { %v230_v10 = vsel %vm222_vm8, %v3205_v56, %v229_v1  ;;  %243 = vst.msk [vmem:[#allocation2 + $0x88] sm:$0xff] %vm3108_vm2, %v231_v5  ;;  %v2351_v40 = vld [vmem:[#allocation2 + $0x68] sm:$0xf] }
  0xe5   :  { %242 = vst [vmem:[#allocation2 + $0x80] sm:$0xff] %v230_v10  ;;  %v2762_v15 = vld [vmem:[#allocation2 + $0x74] sm:$0xf0] }
  0xe6   :  { %185 = vst [vmem:[#allocation2 + $0x30] sm:$0xff] %v170_v6  ;;  %v2344_v17 = vor.u32 %v2762_v15, %v2343_v14 }
  0xe7   :  { %901 = vmatpush.bf16.msrb.mxu2 %v2444_v63  ;;  %v157_v21 = vpop.permute.xlu1 %156  ;;  %v503_v22 = vpop.permute.xlu2 %502 }
  0xe8   :  { %877 = vmatpush.bf16.msra.mxu0 %v2344_v17  ;;  %v155_v24 = vpop.permute.xlu0 %154  ;;  %v165_v56 = vrot.slane %v157_v21, 4  ;;  %v509_v26 = vrot.slane %v503_v22, 4 }
  0xe9   :  { %v164_v28 = vrot.slane %v155_v24, 4 }
  0xea   :  { %v174_v29 = vsel %vm111_vm0, %v165_v56, %v166_v16  ;;  %v518_v30 = vsel %vm111_vm0, %v508_v23, %v509_v26  ;;  %v520_v32 = vsel %vm511_vm7, %v503_v22, %v509_v26 }
  0xeb   :  { %902 = vmatpush.bf16.msrb.mxu2 %v2420_v18  ;;  %v171_v34 = vsel %vm111_vm0, %v163_v51, %v164_v28  ;;  %v173_v36 = vsel %vm169_vm10, %v155_v24, %v164_v28  ;;  %v175_v37 = vsel %vm169_vm10, %v157_v21, %v174_v29  ;;  %532 = vst.msk [vmem:[#allocation2 + $0x1a8] sm:$0xff] %vm3108_vm2, %v520_v32  ;;  %v2287_v32 = vld [vmem:[#allocation7] sm:$0xf] }
  0xec   :  { %v172_v39 = vsel %vm169_vm10, %v3215_v3, %v171_v34  ;;  %187 = vst.msk [vmem:[#allocation2 + $0x40] sm:$0xff] %vm3108_vm2, %v173_v36  ;;  %v519_v23 = vsel %vm511_vm7, %v3225_v20, %v518_v30  ;;  %v2763_v41 = vld [vmem:[#allocation2 + $0x7c] sm:$0xf0]  ;;  %v2345_v3 = vld [vmem:[#allocation2 + $0x78] sm:$0xf0] }
  0xed   :  { %186 = vst [vmem:[#allocation2 + $0x38] sm:$0xff] %v172_v39  ;;  %v2352_v42 = vor.u32 %v2763_v41, %v2351_v40  ;;  %v2759_v20 = vld [vmem:[#allocation2 + $0x64] sm:$0xf]  ;;  %v2319_v58 = vld [vmem:[#allocation2 + $0x30] sm:$0xf] }
  0xee   :  { %188 = vst [vmem:[#allocation2 + $0x48] sm:$0xff] %v175_v37  ;;  %v2348_v50 = vor.u32 %v2759_v20, %v2345_v3  ;;  %v2753_v59 = vld [vmem:[#allocation2 + $0x34] sm:$0xf]  ;;  %v2746_v34 = vld [vmem:[#allocation7 + $0x4] sm:$0xf0] }
  0xef   :  { %903 = vmatpush.bf16.msrb.mxu2 %v2396_v27  ;;  %531 = vst [vmem:[#allocation2 + $0x1a0] sm:$0xff] %v519_v23  ;;  %933 = vmatpush.bf16.msra.mxu1 %v2352_v42  ;;  %v94_v45 = vpop.permute.xlu1 %93  ;;  %v2794_v27 = vld [vmem:[#allocation2 + $0x174] sm:$0xf0]  ;;  %v3313_v42 = vor.u32 %v2746_v34, %v2287_v32  ;;  %v2772_v32 = vld [vmem:[#allocation2 + $0xcc] sm:$0xf] }
  0xf0   :  { %v161_v46 = vpop.permute.xlu0 %160  ;;  %v105_v47 = vrot.slane %v94_v45, 4  ;;  %v2401_v34 = vld [vmem:[#allocation2 + $0xe0] sm:$0xf0] }
  0xf1   :  { %v167_v48 = vrot.slane %v161_v46, 4 }
  0xf2   :  { %v112_v49 = vsel %vm111_vm0, %v105_v47, %v106_v43  ;;  %v2431_v47 = vld [vmem:[#allocation2 + $0x100] sm:$0xf] }
  0xf3   :  { %904 = vmatpush.bf16.msrb.mxu2 %v2372_v44  ;;  %v176_v51 = vsel %vm111_vm0, %v166_v16, %v167_v48  ;;  %v178_v52 = vsel %vm169_vm10, %v161_v46, %v167_v48  ;;  %v114_v55 = vsel %vm113_vm11, %v94_v45, %v112_v49  ;;  %v2788_v44 = vld [vmem:[#allocation2 + $0x144] sm:$0xf0]  ;;  %v2790_v46 = vld [vmem:[#allocation2 + $0x15c] sm:$0xf]  ;;  %v2782_v48 = vld [vmem:[#allocation2 + $0x114] sm:$0xf0] }
  0xf4   :  { %v177_v35 = vsel %vm169_vm10, %v3223_v19, %v176_v51  ;;  %190 = vst.msk [vmem:[#allocation2 + $0x58] sm:$0xff] %vm3108_vm2, %v178_v52  ;;  %v2327_v15 = vld [vmem:[#allocation2 + $0x38] sm:$0xf] }
  0xf5   :  { %189 = vst [vmem:[#allocation2 + $0x50] sm:$0xff] %v177_v35  ;;  %v2756_v60 = vld [vmem:[#allocation2 + $0x44] sm:$0xf0]  ;;  %v2321_v61 = vld [vmem:[#allocation2 + $0x48] sm:$0xf0] }
  0xf6   :  { %129 = vst [vmem:[#allocation2] sm:$0xff] %v114_v55  ;;  %v2320_v63 = vor.u32 %v2756_v60, %v2319_v58  ;;  %v2324_v1 = vor.u32 %v2753_v59, %v2321_v61  ;;  %v2799_v52 = vld [vmem:[#allocation2 + $0x19c] sm:$0xf0]  ;;  %v2497_v55 = vld [vmem:[#allocation2 + $0x1a0] sm:$0xf0] }
  0xf7   :  { %905 = vmatpush.bf16.msrb.mxu2 %v2348_v50  ;;  %v100_v5 = vpop.permute.xlu1 %99  ;;  %v2791_v35 = vld [vmem:[#allocation2 + $0x164] sm:$0xf] }
  0xf8   :  { %878 = vmatpush.bf16.msra.mxu0 %v2320_v63  ;;  %v98_v6 = vpop.permute.xlu0 %97  ;;  %v108_v7 = vrot.slane %v100_v5, 4 }
  0xf9   :  { %v107_v19 = vrot.slane %v98_v6, 4 }
  0xfa   :  { %v118_v8 = vsel %vm111_vm0, %v108_v7, %v109_v62 }
  0xfb   :  { %906 = vmatpush.bf16.msrb.mxu2 %v2324_v1  ;;  %v115_v10 = vsel %vm111_vm0, %v106_v43, %v107_v19  ;;  %v117_v11 = vsel %vm113_vm11, %v98_v6, %v107_v19  ;;  %v119_v13 = vsel %vm113_vm11, %v100_v5, %v118_v8  ;;  %v2473_v1 = vld [vmem:[#allocation2 + $0x170] sm:$0xf0]  ;;  %v2407_v5 = vld [vmem:[#allocation2 + $0xd0] sm:$0xf]  ;;  %v2776_v6 = vld [vmem:[#allocation2 + $0xe4] sm:$0xf0] }
  0xfc   :  { %v116_v14 = vsel %vm113_vm11, %v3237_v31, %v115_v10  ;;  %134 = vst.msk [vmem:[#allocation2 + $0x10] sm:$0xff] %vm3108_vm2, %v117_v11  ;;  %v2757_v16 = vld [vmem:[#allocation2 + $0x4c] sm:$0xf0]  ;;  %v2479_v31 = vld [vmem:[#allocation2 + $0x160] sm:$0xf]  ;;  %v2476_v7 = vor.u32 %v2790_v46, %v2473_v1 }
  0xfd   :  { %130 = vst [vmem:[#allocation2 + $0x8] sm:$0xff] %v116_v14  ;;  %v2328_v17 = vor.u32 %v2757_v16, %v2327_v15  ;;  %v2747_v37 = vld [vmem:[#allocation2 + $0x4] sm:$0xf]  ;;  %v2800_v19 = vld [vmem:[#allocation2 + $0x1a4] sm:$0xf0]  ;;  %v2408_v15 = vor.u32 %v2776_v6, %v2407_v5 }
  0xfe   :  { %135 = vst [vmem:[#allocation2 + $0x18] sm:$0xff] %v119_v13  ;;  %v2449_v13 = vld [vmem:[#allocation2 + $0x140] sm:$0xf0]  ;;  %v2505_v14 = vld [vmem:[#allocation2 + $0x1a8] sm:$0xf0] }
  0xff   :  { %934 = vmatpush.bf16.msra.mxu1 %v2328_v17  ;;  %v497_v18 = vpop.permute.xlu1 %496  ;;  %v2785_v16 = vld [vmem:[#allocation2 + $0x134] sm:$0xf]  ;;  %v2457_v17 = vld [vmem:[#allocation2 + $0x148] sm:$0xf0] }
 0x100   :  { %v104_v21 = vpop.permute.xlu0 %103  ;;  %v506_v22 = vrot.slane %v497_v18, 4 }
 0x101   :  { %v110_v24 = vrot.slane %v104_v21, 4 }
 0x102   :  { %v513_v56 = vsel %vm111_vm0, %v505_v4, %v506_v22  ;;  %v515_v26 = vsel %vm511_vm7, %v497_v18, %v506_v22  ;;  %v2295_v4 = vld [vmem:[#allocation2] sm:$0xf] }
 0x103   :  { %v120_v28 = vsel %vm111_vm0, %v109_v62, %v110_v24  ;;  %v122_v29 = vsel %vm113_vm11, %v104_v21, %v110_v24  ;;  %v514_v30 = vsel %vm511_vm7, %v3213_v2, %v513_v56  ;;  %529 = vst.msk [vmem:[#allocation2 + $0x190] sm:$0xff] %vm3108_vm2, %v515_v26  ;;  %v2480_v2 = vor.u32 %v2794_v27, %v2479_v31  ;;  %v2784_v21 = vld [vmem:[#allocation2 + $0x12c] sm:$0xf]  ;;  %v2425_v26 = vld [vmem:[#allocation2 + $0x110] sm:$0xf0] }
 0x104   :  { %v121_v36 = vsel %vm113_vm11, %v3250_v57, %v120_v28  ;;  %137 = vst.msk [vmem:[#allocation2 + $0x28] sm:$0xff] %vm3108_vm2, %v122_v29  ;;  %v2455_v57 = vld [vmem:[#allocation2 + $0x130] sm:$0xf]  ;;  %v2303_v51 = vld [vmem:[#allocation2 + $0x8] sm:$0xf]  ;;  %v2452_v22 = vor.u32 %v2784_v21, %v2449_v13  ;;  %v2460_v56 = vor.u32 %v2785_v16, %v2457_v17 }
 0x105   :  { %136 = vst [vmem:[#allocation2 + $0x20] sm:$0xff] %v121_v36  ;;  %v2750_v38 = vld [vmem:[#allocation2 + $0x14] sm:$0xf0]  ;;  %v2297_v39 = vld [vmem:[#allocation2 + $0x18] sm:$0xf0]  ;;  %v2456_v50 = vor.u32 %v2788_v44, %v2455_v57 }
 0x106   :  { %528 = vst [vmem:[#allocation2 + $0x188] sm:$0xff] %v514_v30  ;;  %v2296_v23 = vor.u32 %v2750_v38, %v2295_v4  ;;  %v2300_v40 = vor.u32 %v2747_v37, %v2297_v39  ;;  %v2779_v28 = vld [vmem:[#allocation2 + $0x104] sm:$0xf]  ;;  %v2433_v29 = vld [vmem:[#allocation2 + $0x118] sm:$0xf0] }
 0x107   :  { %v275_v41 = vpop.permute.xlu1 %274  ;;  %v2778_v30 = vld [vmem:[#allocation2 + $0xfc] sm:$0xf]  ;;  %v2773_v4 = vld [vmem:[#allocation2 + $0xd4] sm:$0xf]  ;;  %v2409_v37 = vld [vmem:[#allocation2 + $0xe8] sm:$0xf0]  ;;  %v2436_v38 = vor.u32 %v2779_v28, %v2433_v29 }
 0x108   :  { %879 = vmatpush.bf16.msra.mxu0 %v2296_v23  ;;  %907 = vmatpush.bf16.msrb.mxu2 %v2300_v40  ;;  %v267_v25 = vpop.permute.xlu0 %266  ;;  %v283_v43 = vrot.slane %v275_v41, 4  ;;  %v2428_v36 = vor.u32 %v2778_v30, %v2425_v26  ;;  %v2764_v39 = vld [vmem:[#allocation2 + $0x84] sm:$0xf0]  ;;  %v2404_v23 = vor.u32 %v2772_v32, %v2401_v34  ;;  %v2359_v40 = vld [vmem:[#allocation2 + $0x70] sm:$0xf] }
 0x109   :  { %v279_v45 = vrot.slane %v267_v25, 4  ;;  %v2360_v41 = vor.u32 %v2764_v39, %v2359_v40  ;;  %v2377_v25 = vld [vmem:[#allocation2 + $0xb0] sm:$0xf0]  ;;  %v2748_v5 = vld [vmem:[#allocation2 + $0xc] sm:$0xf] }
 0x10a   :  { %v295_v3 = vsel %vm111_vm0, %v282_v53, %v283_v43  ;;  %v2481_v53 = vld [vmem:[#allocation2 + $0x178] sm:$0xf0]  ;;  %v2503_v59 = vld [vmem:[#allocation2 + $0x190] sm:$0xf]  ;;  %v2797_v8 = vld [vmem:[#allocation2 + $0x194] sm:$0xf] }
 0x10b   :  { %v289_v20 = vsel %vm111_vm0, %v278_v33, %v279_v45  ;;  %v296_v49 = vsel %vm285_vm6, %v3183_v9, %v295_v3  ;;  %908 = vmatmul.bf16.vlgmr.msrb.gmra.mxu2 %v3313_v42  ;;  %880 = vmatmul.bf16.vlgmr.msra.gmra.mxu0 %v3313_v42  ;;  %v2504_v10 = vor.u32 %v2800_v19, %v2503_v59  ;;  %v2758_v43 = vld [vmem:[#allocation2 + $0x54] sm:$0xf0]  ;;  %v2766_v45 = vld [vmem:[#allocation2 + $0x9c] sm:$0xf]  ;;  %v2335_v3 = vld [vmem:[#allocation2 + $0x40] sm:$0xf] }
 0x10c   :  { %984 = vmatpush.bf16.msra.mxu2 %v2480_v2  ;;  %v290_v58 = vsel %vm285_vm6, %v3177_v0, %v289_v20  ;;  %308 = vst.msk [vmem:[#allocation2 + $0xb8] sm:$0xff] %vm3108_vm2, %v296_v49  ;;  %v2751_v33 = vld [vmem:[#allocation2 + $0x1c] sm:$0xf0]  ;;  %v2432_v0 = vor.u32 %v2782_v48, %v2431_v47  ;;  %v2484_v11 = vor.u32 %v2791_v35, %v2481_v53  ;;  %v2353_v20 = vld [vmem:[#allocation2 + $0x80] sm:$0xf0] }
 0x10d   :  { %305 = vst.msk [vmem:[#allocation2 + $0xa0] sm:$0xff] %vm3108_vm2, %v290_v58  ;;  %v2304_v9 = vor.u32 %v2751_v33, %v2303_v51  ;;  %v2495_v60 = vld [vmem:[#allocation2 + $0x188] sm:$0xf]  ;;  %v2796_v61 = vld [vmem:[#allocation2 + $0x18c] sm:$0xf]  ;;  %v2508_v18 = vor.u32 %v2797_v8, %v2505_v14  ;;  %v2412_v2 = vor.u32 %v2773_v4, %v2409_v37  ;;  %v2380_v46 = vor.u32 %v2766_v45, %v2377_v25 }
 0x10e   :  { %v2496_v62 = vor.u32 %v2799_v52, %v2495_v60  ;;  %v2500_v63 = vor.u32 %v2796_v61, %v2497_v55  ;;  %v2336_v47 = vor.u32 %v2758_v43, %v2335_v3  ;;  %v2752_v49 = vld [vmem:[#allocation2 + $0x24] sm:$0xf0]  ;;  %v2760_v51 = vld [vmem:[#allocation2 + $0x6c] sm:$0xf]  ;;  %v2311_v52 = vld [vmem:[#allocation2 + $0x10] sm:$0xf] }
 0x10f   :  { %935 = vmatpush.bf16.msra.mxu1 %v2304_v9  ;;  %v2356_v55 = vor.u32 %v2760_v51, %v2353_v20  ;;  %v2312_v35 = vor.u32 %v2752_v49, %v2311_v52  ;;  %v2761_v53 = vld [vmem:[#allocation2 + $0x74] sm:$0xf]  ;;  %v2337_v59 = vld [vmem:[#allocation2 + $0x58] sm:$0xf0]  ;;  %v2755_v61 = vld [vmem:[#allocation2 + $0x44] sm:$0xf] }
 0x110   :  { %985 = vmatpush.bf16.msra.mxu2 %v2456_v50  ;;  %949 = vmatpush.bf16.msrb.mxu3 %v2496_v62  ;;  %v2361_v50 = vld [vmem:[#allocation2 + $0x88] sm:$0xf0]  ;;  %v2329_v33 = vld [vmem:[#allocation2 + $0x50] sm:$0xf0]  ;;  %v2754_v9 = vld [vmem:[#allocation2 + $0x3c] sm:$0xf]  ;;  %v2340_v62 = vor.u32 %v2755_v61, %v2337_v59 }
 0x111   :  { %977 = vmatpush.bf16.msrb.mxu0 %v2500_v63  ;;  %v2364_v58 = vor.u32 %v2761_v53, %v2361_v50  ;;  %v2332_v60 = vor.u32 %v2754_v9, %v2329_v33  ;;  %v2305_v63 = vld [vmem:[#allocation2 + $0x20] sm:$0xf0]  ;;  %v2313_v1 = vld [vmem:[#allocation2 + $0x28] sm:$0xf0] }
 0x112   :  { %936 = vmatmul.bf16.vlgmr.msra.gmra.mxu1 %v3313_v42  ;;  %v2308_v6 = vor.u32 %v2748_v5, %v2305_v63 }
 0x113   :  { %1005 = vmatpush.bf16.msrb.mxu1 %v2504_v10  ;;  %2511 = vmatmul.msk.bf16.vlgmr.msrb.gmra.mxu3 %vm868_vm9, %v3248_v54  ;;  %v2770_v24 = vld [vmem:[#allocation2 + $0xb4] sm:$0xf0]  ;;  %v2385_v44 = vld [vmem:[#allocation2 + $0xb8] sm:$0xf0] }
 0x114   :  { %956 = vmatpush.bf16.msra.mxu3 %v2476_v7  ;;  %986 = vmatpush.bf16.msra.mxu2 %v2432_v0  ;;  %v2383_v31 = vld [vmem:[#allocation2 + $0xa0] sm:$0xf]  ;;  %v2767_v57 = vld [vmem:[#allocation2 + $0xa4] sm:$0xf]  ;;  %v2749_v7 = vld [vmem:[#allocation2 + $0x14] sm:$0xf] }
 0x115   :  { %1012 = vmatpush.bf16.msra.mxu0 %v2484_v11  ;;  %v2384_v27 = vor.u32 %v2770_v24, %v2383_v31  ;;  %v2388_v48 = vor.u32 %v2767_v57, %v2385_v44  ;;  %v2316_v0 = vor.u32 %v2749_v7, %v2313_v1 }
 0x117   :  { %1033 = vmatpush.bf16.msra.mxu1 %v2508_v18 }
 0x118   :  { %957 = vmatpush.bf16.msra.mxu3 %v2452_v22  ;;  %987 = vmatpush.bf16.msra.mxu2 %v2408_v15 }
 0x119   :  { %1013 = vmatpush.bf16.msra.mxu0 %v2460_v56  ;;  %v80_v56 = vld [vmem:[#allocation10] sm:$0x3f] }
 0x11a   :  { %v3349_v28 = vperm.slane %v80_v56, 1  ;;  %v3355_v34 = vperm.slane %v80_v56, 2  ;;  %v3367_v25 = vperm.slane %v80_v56, 5  ;;  %v3371_v44 = vperm.slane %v80_v56, 4 }
 0x11b   :  { %2512 = vmatmul.msk.bf16.vlgmr.msrb.gmra.mxu0 %vm868_vm9, %v3248_v54  ;;  %v3373_v45 = vperm.slane %v80_v56, 3 }
 0x11c   :  { %958 = vmatpush.bf16.msra.mxu3 %v2428_v36  ;;  %988 = vmatpush.bf16.msra.mxu2 %v2384_v27 }
 0x11d   :  { %1014 = vmatpush.bf16.msra.mxu0 %v2436_v38 }
 0x120   :  { %959 = vmatpush.bf16.msra.mxu3 %v2404_v23  ;;  %989 = vmatpush.bf16.msra.mxu2 %v2360_v41 }
 0x121   :  { %1015 = vmatpush.bf16.msra.mxu0 %v2412_v2 }
 0x122   :  { %2513 = vmatmul.msk.bf16.vlgmr.msrb.gmra.mxu1 %vm868_vm9, %v3248_v54 }
 0x124   :  { %960 = vmatpush.bf16.msra.mxu3 %v2380_v46  ;;  %990 = vmatpush.bf16.msra.mxu2 %v2336_v47 }
 0x125   :  { %1016 = vmatpush.bf16.msra.mxu0 %v2388_v48 }
 0x128   :  { %961 = vmatpush.bf16.msra.mxu3 %v2356_v55  ;;  %991 = vmatpush.bf16.msra.mxu2 %v2312_v35 }
 0x129   :  { %1017 = vmatpush.bf16.msra.mxu0 %v2364_v58 }
 0x12b   :  { %992 = vmatmul.bf16.vlgmr.msra.gmra.mxu2 %v3313_v42 }
 0x12c   :  { %962 = vmatpush.bf16.msra.mxu3 %v2332_v60 }
 0x12d   :  { %1018 = vmatpush.bf16.msra.mxu0 %v2340_v62 }
 0x130   :  { %963 = vmatpush.bf16.msra.mxu3 %v2308_v6 }
 0x131   :  { %1019 = vmatpush.bf16.msra.mxu0 %v2316_v0 }
 0x132   :  { %2514 = vmatmul.msk.bf16.vlgmr.msra.gmra.mxu1 %vm868_vm9, %v3248_v54 }
 0x133   :  { %964 = vmatmul.bf16.vlgmr.msra.gmra.mxu3 %v3313_v42 }
 0x134   :  { %1020 = vmatmul.bf16.vlgmr.msra.gmra.mxu0 %v3313_v42  ;;  %v3345_v42 = vperm.slane %v80_v56, 0 }
 0x165   :  { %v895_v19 = vpop.f32.mrf.mxu2  ;;  %v923_v10 = vpop.f32.mrf.mxu3 }
 0x16d   :  { %v897_v13 = vpop.f32.mrf.mxu2  ;;  %v925_v15 = vpop.f32.mrf.mxu3 }
 0x188   :  { %v881_v8 = vpop.f32.mrf.mxu0 }
 0x189   :  { %v3343_v31 = vadd.f32 %v895_v19, %v881_v8 }
 0x18b   :  { %v1053_v30 = vmul.f32 %v3345_v42, %v3343_v31 }
 0x18d   :  { %v1082_v38 = vmul.f32 %v1053_v30, %v3343_v31 }
 0x18e   :  { %v909_v18 = vpop.f32.mrf.mxu2 }
 0x18f   :  { %v937_v11 = vpop.f32.mrf.mxu1  ;;  %v3347_v27 = vadd.f32 %v923_v10, %v909_v18 }
 0x190   :  { %v883_v14 = vpop.f32.mrf.mxu0 }
 0x191   :  { %v1054_v36 = vmul.f32 %v3349_v28, %v3347_v27  ;;  %v3375_v3 = vadd.f32 %v897_v13, %v883_v14 }
 0x193   :  { %v1083_v40 = vmul.f32 %v1054_v36, %v3347_v27  ;;  %v1065_v43 = vadd.f32 %v1054_v36, %v1053_v30  ;;  %v1059_v53 = vmul.f32 %v3345_v42, %v3375_v3 }
 0x195   :  { %v1094_v49 = vadd.f32 %v1083_v40, %v1082_v38  ;;  %v1088_v10 = vmul.f32 %v1059_v53, %v3375_v3 }
 0x196   :  { %v951_v22 = vpop.f32.mrf.mxu3  ;;  %v911_v26 = vpop.f32.mrf.mxu2 }
 0x197   :  { %v939_v16 = vpop.f32.mrf.mxu1  ;;  %v3353_v32 = vadd.f32 %v951_v22, %v937_v11  ;;  %v3363_v2 = vadd.f32 %v925_v15, %v911_v26 }
 0x198   :  { %v979_v17 = vpop.f32.mrf.mxu0 }
 0x199   :  { %v1055_v39 = vmul.f32 %v3355_v34, %v3353_v32  ;;  %v1060_v50 = vmul.f32 %v3349_v28, %v3363_v2 }
 0x19b   :  { %v1084_v47 = vmul.f32 %v1055_v39, %v3353_v32  ;;  %v1066_v52 = vadd.f32 %v1065_v43, %v1055_v39  ;;  %v1089_v63 = vmul.f32 %v1060_v50, %v3363_v2  ;;  %v1074_v11 = vadd.f32 %v1060_v50, %v1059_v53 }
 0x19d   :  { %v1095_v33 = vadd.f32 %v1094_v49, %v1084_v47  ;;  %v1102_v18 = vadd.f32 %v1089_v63, %v1088_v10  ;;  %v3029_v49 = vmov 0  }
 0x19e   :  { %v953_v29 = vpop.f32.mrf.mxu3  ;;  %1180 = vst.msk [vmem:[#allocation3 + $0x18] sm:$0xff] %vm3108_vm2, %v3029_v49 }
 0x19f   :  { %v1007_v21 = vpop.f32.mrf.mxu1  ;;  %v3378_v48 = vadd.f32 %v953_v29, %v939_v16  ;;  %1178 = vst [vmem:[#allocation3] sm:$0xf] %v3029_v49 }
 0x1a0   :  { %v981_v24 = vpop.f32.mrf.mxu0  ;;  %1179 = vst [vmem:[#allocation3 + $0x20] sm:$0xf] %v3029_v49 }
 0x1a1   :  { %v1061_v59 = vmul.f32 %v3355_v34, %v3378_v48  ;;  %1181 = vst.msk [vmem:[#allocation3 + $0x38] sm:$0xff] %vm3108_vm2, %v3029_v49 }
 0x1a3   :  { %v1090_v14 = vmul.f32 %v1061_v59, %v3378_v48  ;;  %v1075_v56 = vadd.f32 %v1074_v11, %v1061_v59 }
 0x1a5   :  { %v1103_v30 = vadd.f32 %v1102_v18, %v1090_v14 }
 0x1a7   :  { %v1009_v54 = vpop.f32.mrf.mxu1 }
 0x1ae   :  { %v993_v4 = vpop.f32.mrf.mxu2 }
 0x1af   :  { %v1035_v23 = vpop.f32.mrf.mxu1  ;;  %v3369_v57 = vadd.f32 %v1007_v21, %v993_v4 }
 0x1b1   :  { %v1021_v37 = vpop.f32.mrf.mxu0  ;;  %v1057_v55 = vmul.f32 %v3371_v44, %v3369_v57 }
 0x1b2   :  { %v3365_v41 = vadd.f32 %v1035_v23, %v1021_v37 }
 0x1b3   :  { %v1086_v7 = vmul.f32 %v1057_v55, %v3369_v57 }
 0x1b4   :  { %v1058_v51 = vmul.f32 %v3367_v25, %v3365_v41 }
 0x1b6   :  { %v965_v46 = vpop.f32.mrf.mxu3  ;;  %v995_v58 = vpop.f32.mrf.mxu2  ;;  %v1070_v5 = vsel %vm1069_vm12, %v1058_v51, 0.0  ;;  %v1087_v6 = vmul.f32 %v1058_v51, %v3365_v41 }
 0x1b7   :  { %v3380_v20 = vadd.f32 %v979_v17, %v965_v46  ;;  %v1037_v61 = vpop.f32.mrf.mxu1  ;;  %v3401_v0 = vadd.f32 %v1009_v54, %v995_v58 }
 0x1b8   :  { %v1098_v21 = vsel %vm1069_vm12, %v1087_v6, 0.0 }
 0x1b9   :  { %v1056_v35 = vmul.f32 %v3373_v45, %v3380_v20  ;;  %v1023_v60 = vpop.f32.mrf.mxu0  ;;  %v1063_v26 = vmul.f32 %v3371_v44, %v3401_v0 }
 0x1ba   :  { %v3396_v1 = vadd.f32 %v1037_v61, %v1023_v60 }
 0x1bb   :  { %v1085_v9 = vmul.f32 %v1056_v35, %v3380_v20  ;;  %v1067_v62 = vadd.f32 %v1066_v52, %v1056_v35  ;;  %v1092_v37 = vmul.f32 %v1063_v26, %v3401_v0 }
 0x1bc   :  { %v1064_v22 = vmul.f32 %v3367_v25, %v3396_v1 }
 0x1bd   :  { %v1068_v19 = vadd.f32 %v1067_v62, %v1057_v55  ;;  %v1096_v8 = vadd.f32 %v1095_v33, %v1085_v9 }
 0x1be   :  { %v967_v13 = vpop.f32.mrf.mxu3  ;;  %v1093_v4 = vmul.f32 %v1064_v22, %v3396_v1  ;;  %v1078_v23 = vsel %vm1069_vm12, %v1064_v22, 0.0 }
 0x1bf   :  { %v3405_v15 = vadd.f32 %v981_v24, %v967_v13  ;;  %v1071_v16 = vadd.f32 %v1070_v5, %v1068_v19  ;;  %v1097_v17 = vadd.f32 %v1096_v8, %v1086_v7 }
 0x1c0   :  { %v1106_v46 = vsel %vm1069_vm12, %v1093_v4, 0.0 }
 0x1c1   :  { %v1062_v54 = vmul.f32 %v3373_v45, %v3405_v15  ;;  %1072 = vadd.xlane.f32.xlu2 %v1071_v16  ;;  %v1099_v29 = vadd.f32 %v1098_v21, %v1097_v17 }
 0x1c3   :  { %v1091_v24 = vmul.f32 %v1062_v54, %v3405_v15  ;;  %1100 = vadd.xlane.f32.xlu1 %v1099_v29  ;;  %v1076_v36 = vadd.f32 %v1075_v56, %v1062_v54 }
 0x1c5   :  { %v1077_v38 = vadd.f32 %v1076_v36, %v1063_v26  ;;  %v1104_v39 = vadd.f32 %v1103_v30, %v1091_v24 }
 0x1c7   :  { %v1079_v40 = vadd.f32 %v1078_v23, %v1077_v38  ;;  %v1105_v43 = vadd.f32 %v1104_v39, %v1092_v37 }
 0x1c9   :  { %1080 = vadd.xlane.f32.xlu0 %v1079_v40  ;;  %v1107_v47 = vadd.f32 %v1106_v46, %v1105_v43 }
 0x1cb   :  { %1108 = vadd.xlane.f32.xlu2 %v1107_v47 }
 0x234   :  { %v1073_v50 = vpop.xlane.xlu2 %1072 }
 0x235   :  { %v1110_v51 = vmul.f32 0.001953125, %v1073_v50 }
 0x236   :  { %v1101_v52 = vpop.xlane.xlu1 %1100 }
 0x237   :  { %v1112_v55 = vmul.f32 0.001953125, %v1101_v52  ;;  %v1114_v35 = vmul.f32 %v1110_v51, %v1110_v51  ;;  %v1120_v16 = vsub.f32 %v3343_v31, %v1110_v51  ;;  %v1121_v17 = vsub.f32 %v3347_v27, %v1110_v51 }
 0x238   :  { %v1122_v18 = vsub.f32 %v3353_v32, %v1110_v51  ;;  %v1123_v21 = vsub.f32 %v3380_v20, %v1110_v51  ;;  %v1124_v22 = vsub.f32 %v3369_v57, %v1110_v51  ;;  %v1125_v56 = vsub.f32 %v3365_v41, %v1110_v51 }
 0x239   :  { %v1116_v53 = vsub.f32 %v1112_v55, %v1114_v35 }
 0x23b   :  { %v1118_v58 = vmax.f32 %v1116_v53, 0.0 }
 0x23c   :  { %v1081_v33 = vpop.xlane.xlu0 %1080 }
 0x23d   :  { %v1132_v59 = vadd.f32 1e-05, %v1118_v58  ;;  %v3423_v9 = vmul.f32 0.001953125, %v1081_v33 }
 0x23e   :  { %v1109_v60 = vpop.xlane.xlu2 %1108 }
 0x23f   :  { %2877 = vrsqrt.f32 %v1132_v59  ;;  %v1115_v61 = vmul.f32 %v3423_v9, %v3423_v9  ;;  %v1113_v62 = vmul.f32 0.001953125, %v1109_v60  ;;  %vm1140_vm14 = vweird.f32 %v1132_v59 }
 0x240   :  { %v1126_v49 = vsub.f32 %v3375_v3, %v3423_v9  ;;  %v1127_v50 = vsub.f32 %v3363_v2, %v3423_v9  ;;  %v1128_v51 = vsub.f32 %v3378_v48, %v3423_v9  ;;  %v1129_v52 = vsub.f32 %v3405_v15, %v3423_v9 }
 0x241   :  { %v1117_v63 = vsub.f32 %v1113_v62, %v1115_v61  ;;  %v1130_v55 = vsub.f32 %v3401_v0, %v3423_v9  ;;  %v1131_v35 = vsub.f32 %v3396_v1, %v3423_v9 }
 0x243   :  { %v1119_v6 = vmax.f32 %v1117_v63, 0.0 }
 0x245   :  { %v2878_v5 = vpop.eup %2877  ;;  %v1133_v19 = vadd.f32 1e-05, %v1119_v6 }
 0x246   :  { %v1135_v7 = vmul.f32 %v2878_v5, %v1132_v59  ;;  %vm1141_vm13 = vweird.f32 %v2878_v5 }
 0x247   :  { %2879 = vrsqrt.f32 %v1133_v19  ;;  %vm1142_vm15 = vmor %vm1140_vm14, %vm1141_vm13  ;;  %vm1150_vm13 = vweird.f32 %v1133_v19 }
 0x248   :  { %v1136_v8 = vmul.f32 %v2878_v5, %v1135_v7 }
 0x24a   :  { %v1137_v10 = vmul.f32 0.5, %v1136_v8 }
 0x24c   :  { %v1138_v11 = vsub.f32 1.5, %v1137_v10 }
 0x24d   :  { %v2880_v14 = vpop.eup %2879 }
 0x24e   :  { %v1139_v13 = vmul.f32 %v2878_v5, %v1138_v11  ;;  %v1145_v54 = vmul.f32 %v2880_v14, %v1133_v19  ;;  %vm1151_vm1 = vweird.f32 %v2880_v14 }
 0x24f   :  { %vm1152_vm14 = vmor %vm1150_vm13, %vm1151_vm1 }
 0x250   :  { %v1143_v26 = vsel %vm1142_vm15, %v2878_v5, %v1139_v13  ;;  %v1146_v31 = vmul.f32 %v2880_v14, %v1145_v54 }
 0x251   :  { %v1154_v29 = vmul.f32 %v1143_v26, %v1120_v16  ;;  %v1155_v30 = vmul.f32 %v1143_v26, %v1121_v17  ;;  %v1156_v24 = vmul.f32 %v1143_v26, %v1122_v18  ;;  %v1157_v36 = vmul.f32 %v1143_v26, %v1123_v21 }
 0x252   :  { %v1158_v4 = vmul.f32 %v1143_v26, %v1124_v22  ;;  %v1159_v37 = vmul.f32 %v1143_v26, %v1125_v56  ;;  %v1147_v39 = vmul.f32 0.5, %v1146_v31 }
 0x253   :  { %v1166_v27 = vmul.f32 %v1154_v29, %v3345_v42  ;;  %v1167_v32 = vmul.f32 %v1155_v30, %v3349_v28  ;;  %v1168_v20 = vmul.f32 %v1156_v24, %v3355_v34  ;;  %v1169_v38 = vmul.f32 %v1157_v36, %v3373_v45 }
 0x254   :  { %v1170_v57 = vmul.f32 %v1158_v4, %v3371_v44  ;;  %v1171_v41 = vmul.f32 %v1159_v37, %v3367_v25  ;;  %v1148_v46 = vsub.f32 1.5, %v1147_v39 }
 0x255   :  { %v3439_v23 = vpack.c.bf16 %v1167_v32, %v1166_v27  ;;  %v1183_v40 = vpack.c.bf16 %v1169_v38, %v1168_v20 }
 0x256   :  { %v1184_v43 = vpack.c.bf16 %v1171_v41, %v1170_v57  ;;  %v1149_v47 = vmul.f32 %v2880_v14, %v1148_v46 }
 0x257   :  { %1188 = vst [vmem:[#allocation3 + $0x4] sm:$0xff] %v3439_v23  ;;  %1544 = vrot.lane.b32.xlu0 %v1183_v40, %s3021_s2  ;;  %1492 = vrot.lane.b32.xlu1 %v1183_v40, %s3022_s3 }
 0x258   :  { %1189 = vst [vmem:[#allocation3 + $0xc] sm:$0xff] %v1183_v40  ;;  %1542 = vrot.lane.b32.xlu2 %v3439_v23, %s3021_s2  ;;  %v1153_v53 = vsel %vm1152_vm14, %v2880_v14, %v1149_v47 }
 0x259   :  { %1190 = vst.msk [vmem:[#allocation3 + $0x14] sm:$0xff] %vm3108_vm2, %v1184_v43  ;;  %v1160_v3 = vmul.f32 %v1153_v53, %v1126_v49  ;;  %v1161_v58 = vmul.f32 %v1153_v53, %v1127_v50  ;;  %v1162_v33 = vmul.f32 %v1153_v53, %v1128_v51  ;;  %v1163_v2 = vmul.f32 %v1153_v53, %v1129_v52 }
 0x25a   :  { %1420 = vst [vmem:[#allocation2 + $0xc0] sm:$0xff] %v3439_v23  ;;  %v1164_v59 = vmul.f32 %v1153_v53, %v1130_v55  ;;  %v1165_v48 = vmul.f32 %v1153_v53, %v1131_v35 }
 0x25b   :  { %1421 = vst [vmem:[#allocation2 + $0xc8] sm:$0xff] %v1183_v40  ;;  %v1172_v60 = vmul.f32 %v1160_v3, %v3345_v42  ;;  %v1173_v15 = vmul.f32 %v1161_v58, %v3349_v28  ;;  %v1174_v61 = vmul.f32 %v1162_v33, %v3355_v34  ;;  %v1175_v0 = vmul.f32 %v1163_v2, %v3373_v45 }
 0x25c   :  { %v1176_v1 = vmul.f32 %v1164_v59, %v3371_v44  ;;  %v1177_v9 = vmul.f32 %v1165_v48, %v3367_v25 }
 0x25d   :  { %v1185_v62 = vpack.c.bf16 %v1173_v15, %v1172_v60  ;;  %v1186_v63 = vpack.c.bf16 %v1175_v0, %v1174_v61 }
 0x25e   :  { %v1187_v5 = vpack.c.bf16 %v1177_v9, %v1176_v1  ;;  %v1350_v7 = vld [vmem:[#allocation3] sm:$0xff] }
 0x25f   :  { %1440 = vrot.lane.b32.xlu0 %v1183_v40, %s3023_s11  ;;  %1438 = vrot.lane.b32.xlu1 %v3439_v23, %s3023_s11  ;;  %1191 = vst [vmem:[#allocation3 + $0x24] sm:$0xff] %v1185_v62  ;;  %v1351_v19 = vld [vmem:[#allocation3 + $0x8] sm:$0xff] }
 0x260   :  { %1490 = vrot.lane.b32.xlu2 %v3439_v23, %s3022_s3  ;;  %1192 = vst [vmem:[#allocation3 + $0x2c] sm:$0xff] %v1186_v63  ;;  %v1532_v6 = vld [vmem:[#allocation3 + $0x14] sm:$0xff] }
 0x261   :  { %1193 = vst.msk [vmem:[#allocation3 + $0x34] sm:$0xff] %vm3108_vm2, %v1187_v5  ;;  %v1352_v10 = vld [vmem:[#allocation3 + $0x10] sm:$0xff]  ;;  %v1353_v46 = vld [vmem:[#allocation3 + $0x18] sm:$0xf] }
 0x262   :  { %1423 = vst [vmem:[#allocation2 + $0xd8] sm:$0xff] %v1185_v62 }
 0x263   :  { %1424 = vst [vmem:[#allocation2 + $0xe0] sm:$0xff] %v1186_v63 }
 0x264   :  { %1422 = vst.msk [vmem:[#allocation2 + $0xd0] sm:$0xff] %vm3108_vm2, %v1532_v6 }
 0x266   :  { %v1354_v11 = vld [vmem:[#allocation3 + $0x20] sm:$0xff] }
 0x267   :  { %1596 = vrot.lane.b32.xlu1 %v1183_v40, %s3025_s13  ;;  %1366 = vrot.lane.b32.xlu0 %v1350_v7, %s3024_s12  ;;  %v1355_v13 = vld [vmem:[#allocation3 + $0x28] sm:$0xff] }
 0x268   :  { %1368 = vrot.lane.b32.xlu2 %v1351_v19, %s3024_s12  ;;  %v1535_v8 = vld [vmem:[#allocation3 + $0x34] sm:$0xff] }
 0x269   :  { %1425 = vst.msk [vmem:[#allocation2 + $0xe8] sm:$0xff] %vm3108_vm2, %v1535_v8  ;;  %v1356_v18 = vld [vmem:[#allocation3 + $0x30] sm:$0xff]  ;;  %v1357_v47 = vld [vmem:[#allocation3 + $0x38] sm:$0xf] }
 0x26f   :  { %1370 = vrot.lane.b32.xlu1 %v1352_v10, %s3024_s12  ;;  %1310 = vrot.lane.b32.xlu0 %v1350_v7, %s3026_s14 }
 0x270   :  { %1546 = vrot.lane.b32.xlu2 %v1532_v6, %s3021_s2 }
 0x277   :  { %1258 = vrot.lane.b32.xlu0 %v1350_v7, %s3027_s15  ;;  %1548 = vrot.lane.b32.xlu1 %v1185_v62, %s3021_s2 }
 0x278   :  { %1312 = vrot.lane.b32.xlu2 %v1351_v19, %s3026_s14 }
 0x27f   :  { %1206 = vrot.lane.b32.xlu0 %v1350_v7, %s3028_s16  ;;  %1210 = vrot.lane.b32.xlu1 %v1352_v10, %s3028_s16 }
 0x280   :  { %1494 = vrot.lane.b32.xlu2 %v1532_v6, %s3022_s3 }
 0x287   :  { %1550 = vrot.lane.b32.xlu0 %v1186_v63, %s3021_s2  ;;  %1446 = vrot.lane.b32.xlu1 %v1186_v63, %s3023_s11 }
 0x288   :  { %1260 = vrot.lane.b32.xlu2 %v1351_v19, %s3027_s15 }
 0x28f   :  { %1496 = vrot.lane.b32.xlu0 %v1185_v62, %s3022_s3  ;;  %1374 = vrot.lane.b32.xlu1 %v1354_v11, %s3024_s12 }
 0x290   :  { %1442 = vrot.lane.b32.xlu2 %v1532_v6, %s3023_s11 }
 0x297   :  { %1262 = vrot.lane.b32.xlu0 %v1352_v10, %s3027_s15  ;;  %1552 = vrot.lane.b32.xlu1 %v1535_v8, %s3021_s2 }
 0x298   :  { %1208 = vrot.lane.b32.xlu2 %v1351_v19, %s3028_s16 }
 0x29f   :  { %1376 = vrot.lane.b32.xlu0 %v1355_v13, %s3024_s12  ;;  %1316 = vrot.lane.b32.xlu1 %v1354_v11, %s3026_s14 }
 0x2a0   :  { %1594 = vrot.lane.b32.xlu2 %v3439_v23, %s3025_s13 }
 0x2a7   :  { %1318 = vrot.lane.b32.xlu0 %v1355_v13, %s3026_s14  ;;  %1500 = vrot.lane.b32.xlu1 %v1535_v8, %s3022_s3 }
 0x2a8   :  { %1498 = vrot.lane.b32.xlu2 %v1186_v63, %s3022_s3 }
 0x2af   :  { %1266 = vrot.lane.b32.xlu0 %v1355_v13, %s3027_s15  ;;  %1264 = vrot.lane.b32.xlu1 %v1354_v11, %s3027_s15 }
 0x2b0   :  { %1444 = vrot.lane.b32.xlu2 %v1185_v62, %s3023_s11 }
 0x2b2   :  { %v1543_v14 = vpop.permute.xlu2 %1542 }
 0x2b3   :  { %v1554_v56 = vrot.slane %v1543_v14, 4 }
 0x2b7   :  { %1448 = vrot.lane.b32.xlu1 %v1535_v8, %s3023_s11  ;;  %1214 = vrot.lane.b32.xlu0 %v1355_v13, %s3028_s16 }
 0x2b8   :  { %1314 = vrot.lane.b32.xlu2 %v1352_v10, %s3026_s14 }
 0x2ba   :  { %v1491_v16 = vpop.permute.xlu2 %1490 }
 0x2bb   :  { %v1502_v26 = vrot.slane %v1491_v16, 4 }
 0x2bf   :  { %1600 = vrot.lane.b32.xlu0 %v1185_v62, %s3025_s13  ;;  %1212 = vrot.lane.b32.xlu1 %v1354_v11, %s3028_s16 }
 0x2c0   :  { %1602 = vrot.lane.b32.xlu2 %v1186_v63, %s3025_s13 }
 0x2c2   :  { %v1369_v17 = vpop.permute.xlu2 %1368 }
 0x2c3   :  { %v1383_v51 = vrot.slane %v1369_v17, 4 }
 0x2c7   :  { %1378 = vrot.lane.b32.xlu0 %v1356_v18, %s3024_s12  ;;  %1320 = vrot.lane.b32.xlu1 %v1356_v18, %s3026_s14 }
 0x2c8   :  { %1598 = vrot.lane.b32.xlu2 %v1532_v6, %s3025_s13 }
 0x2c9   :  { %v1545_v21 = vpop.permute.xlu0 %1544  ;;  %v1493_v22 = vpop.permute.xlu1 %1492 }
 0x2ca   :  { %v1555_v54 = vrot.slane %v1545_v21, 4  ;;  %v1503_v29 = vrot.slane %v1493_v22, 4  ;;  %v1547_v30 = vpop.permute.xlu2 %1546 }
 0x2cb   :  { %v1556_v24 = vrot.slane %v1547_v30, 4 }
 0x2cc   :  { %v1560_v36 = vsel %vm111_vm0, %v1554_v56, %v1555_v54  ;;  %v1508_v4 = vsel %vm111_vm0, %v1502_v26, %v1503_v29 }
 0x2cd   :  { %v1561_v37 = vsel %vm458_vm3, %v1543_v14, %v1560_v36  ;;  %v1509_v31 = vsel %vm405_vm4, %v1491_v16, %v1508_v4  ;;  %v1562_v27 = vsel %vm111_vm0, %v1555_v54, %v1556_v24  ;;  %v1564_v20 = vsel %vm458_vm3, %v1547_v30, %v1556_v24 }
 0x2ce   :  { %1576 = vst [vmem:[#allocation2 + $0x150] sm:$0xff] %v1561_v37  ;;  %v1563_v32 = vsel %vm458_vm3, %v1545_v21, %v1562_v27 }
 0x2cf   :  { %1524 = vst [vmem:[#allocation2 + $0x120] sm:$0xff] %v1509_v31  ;;  %1216 = vrot.lane.b32.xlu0 %v1356_v18, %s3028_s16  ;;  %1604 = vrot.lane.b32.xlu1 %v1535_v8, %s3025_s13 }
 0x2d0   :  { %1577 = vst [vmem:[#allocation2 + $0x158] sm:$0xff] %v1563_v32  ;;  %1268 = vrot.lane.b32.xlu2 %v1356_v18, %s3027_s15 }
 0x2d1   :  { %1578 = vst.msk [vmem:[#allocation2 + $0x160] sm:$0xff] %vm3108_vm2, %v1564_v20  ;;  %v1441_v38 = vpop.permute.xlu0 %1440  ;;  %v1439_v57 = vpop.permute.xlu1 %1438 }
 0x2d2   :  { %v1451_v41 = vrot.slane %v1441_v38, 4  ;;  %v1450_v39 = vrot.slane %v1439_v57, 4  ;;  %v3530_v23 = vpop.permute.xlu2 %1312 }
 0x2d3   :  { %v1323_v60 = vrot.slane %v3530_v23, 4 }
 0x2d4   :  { %v1456_v40 = vsel %vm111_vm0, %v1450_v39, %v1451_v41 }
 0x2d5   :  { %v1457_v43 = vsel %vm352_vm5, %v1439_v57, %v1456_v40 }
 0x2d6   :  { %1472 = vst [vmem:[#allocation2 + $0xf0] sm:$0xff] %v1457_v43 }
 0x2d7   :  { %1372 = vrot.lane.b32.xlu0 %v1353_v46, %s3024_s12 }
 0x2d8   :  { %1380 = vrot.lane.b32.xlu2 %v1357_v47, %s3024_s12 }
 0x2d9   :  { %v3536_v49 = vpop.permute.xlu1 %1596  ;;  %v1367_v50 = vpop.permute.xlu0 %1366 }
 0x2da   :  { %v1382_v52 = vrot.slane %v1367_v50, 4  ;;  %v1495_v55 = vpop.permute.xlu2 %1494 }
 0x2db   :  { %v1504_v35 = vrot.slane %v1495_v55, 4 }
 0x2dc   :  { %v1390_v53 = vsel %vm111_vm0, %v1382_v52, %v1383_v51 }
 0x2dd   :  { %v1391_v3 = vsel %vm285_vm6, %v1367_v50, %v1390_v53  ;;  %v1510_v58 = vsel %vm111_vm0, %v1503_v29, %v1504_v35  ;;  %v1512_v33 = vsel %vm405_vm4, %v1495_v55, %v1504_v35  ;;  %v2693_v55 = vld [vmem:[#allocation2 + $0x150] sm:$0xf] }
 0x2de   :  { %1408 = vst [vmem:[#allocation2 + $0x90] sm:$0xff] %v1391_v3  ;;  %v1511_v2 = vsel %vm405_vm4, %v1493_v22, %v1510_v58  ;;  %v2845_v3 = vld [vmem:[#allocation2 + $0x154] sm:$0xf] }
 0x2df   :  { %1525 = vst [vmem:[#allocation2 + $0x128] sm:$0xff] %v1511_v2 }
 0x2e0   :  { %1526 = vst.msk [vmem:[#allocation2 + $0x130] sm:$0xff] %vm3108_vm2, %v1512_v33 }
 0x2e1   :  { %v3545_v59 = vpop.permute.xlu1 %1370  ;;  %v1311_v48 = vpop.permute.xlu0 %1310 }
 0x2e2   :  { %v1384_v15 = vrot.slane %v3545_v59, 4  ;;  %v1322_v61 = vrot.slane %v1311_v48, 4  ;;  %v3549_v0 = vpop.permute.xlu2 %1260 }
 0x2e3   :  { %v1271_v7 = vrot.slane %v3549_v0, 4 }
 0x2e4   :  { %v1392_v1 = vsel %vm111_vm0, %v1383_v51, %v1384_v15  ;;  %v1328_v9 = vsel %vm111_vm0, %v1322_v61, %v1323_v60 }
 0x2e5   :  { %v1393_v62 = vsel %vm285_vm6, %v1369_v17, %v1392_v1  ;;  %v1329_v63 = vsel %vm222_vm8, %v1311_v48, %v1328_v9 }
 0x2e6   :  { %1409 = vst [vmem:[#allocation2 + $0x98] sm:$0xff] %v1393_v62 }
 0x2e7   :  { %1344 = vst [vmem:[#allocation2 + $0x60] sm:$0xff] %v1329_v63 }
 0x2e9   :  { %v1259_v5 = vpop.permute.xlu0 %1258  ;;  %v1549_v6 = vpop.permute.xlu1 %1548 }
 0x2ea   :  { %v1270_v19 = vrot.slane %v1259_v5, 4  ;;  %v1443_v8 = vpop.permute.xlu2 %1442  ;;  %v1557_v27 = vrot.slane %v1549_v6, 4 }
 0x2eb   :  { %v1452_v10 = vrot.slane %v1443_v8, 4 }
 0x2ec   :  { %v1276_v11 = vsel %vm111_vm0, %v1270_v19, %v1271_v7 }
 0x2ed   :  { %v1277_v13 = vsel %vm169_vm10, %v1259_v5, %v1276_v11  ;;  %v1458_v14 = vsel %vm111_vm0, %v1451_v41, %v1452_v10  ;;  %v1460_v16 = vsel %vm352_vm5, %v1443_v8, %v1452_v10 }
 0x2ee   :  { %1292 = vst [vmem:[#allocation2 + $0x30] sm:$0xff] %v1277_v13  ;;  %v1459_v17 = vsel %vm352_vm5, %v1441_v38, %v1458_v14  ;;  %v1607_v38 = vrot.slane %v3536_v49, 4 }
 0x2ef   :  { %1473 = vst [vmem:[#allocation2 + $0xf8] sm:$0xff] %v1459_v17  ;;  %v2669_v17 = vld [vmem:[#allocation2 + $0x120] sm:$0xf] }
 0x2f0   :  { %1474 = vst.msk [vmem:[#allocation2 + $0x100] sm:$0xff] %vm3108_vm2, %v1460_v16 }
 0x2f1   :  { %v1207_v18 = vpop.permute.xlu0 %1206  ;;  %v1211_v21 = vpop.permute.xlu1 %1210 }
 0x2f2   :  { %v1218_v22 = vrot.slane %v1207_v18, 4  ;;  %v1220_v56 = vrot.slane %v1211_v21, 4  ;;  %v1209_v26 = vpop.permute.xlu2 %1208 }
 0x2f3   :  { %v1219_v54 = vrot.slane %v1209_v26, 4 }
 0x2f4   :  { %v1228_v29 = vsel %vm113_vm11, %v1211_v21, %v1220_v56 }
 0x2f5   :  { %1242 = vst.msk [vmem:[#allocation2 + $0x10] sm:$0xff] %vm3108_vm2, %v1228_v29  ;;  %v1224_v30 = vsel %vm111_vm0, %v1218_v22, %v1219_v54  ;;  %v1226_v24 = vsel %vm111_vm0, %v1219_v54, %v1220_v56 }
 0x2f6   :  { %v1225_v36 = vsel %vm113_vm11, %v1207_v18, %v1224_v30  ;;  %v1227_v4 = vsel %vm113_vm11, %v1209_v26, %v1226_v24 }
 0x2f7   :  { %1240 = vst [vmem:[#allocation2] sm:$0xff] %v1225_v36 }
 0x2f8   :  { %1241 = vst [vmem:[#allocation2 + $0x8] sm:$0xff] %v1227_v4 }
 0x2f9   :  { %v1551_v37 = vpop.permute.xlu0 %1550  ;;  %v3576_v31 = vpop.permute.xlu1 %1446 }
 0x2fa   :  { %v1558_v32 = vrot.slane %v1551_v37, 4  ;;  %v1595_v20 = vpop.permute.xlu2 %1594  ;;  %v1454_v5 = vrot.slane %v3576_v31, 4 }
 0x2fb   :  { %v1606_v57 = vrot.slane %v1595_v20, 4 }
 0x2fc   :  { %v1565_v41 = vsel %vm111_vm0, %v1557_v27, %v1558_v32 }
 0x2fd   :  { %v1566_v39 = vsel %vm458_vm3, %v1549_v6, %v1565_v41  ;;  %v1612_v40 = vsel %vm111_vm0, %v1606_v57, %v1607_v38  ;;  %v2645_v57 = vld [vmem:[#allocation2 + $0xf0] sm:$0xf]  ;;  %v2833_v41 = vld [vmem:[#allocation2 + $0xf4] sm:$0xf] }
 0x2fe   :  { %1579 = vst [vmem:[#allocation2 + $0x168] sm:$0xff] %v1566_v39  ;;  %v1613_v43 = vsel %vm511_vm7, %v1595_v20, %v1612_v40 }
 0x2ff   :  { %1628 = vst [vmem:[#allocation2 + $0x180] sm:$0xff] %v1613_v43 }
 0x301   :  { %v1497_v46 = vpop.permute.xlu0 %1496  ;;  %v1375_v47 = vpop.permute.xlu1 %1374 }
 0x302   :  { %v1505_v50 = vrot.slane %v1497_v46, 4  ;;  %v3585_v51 = vpop.permute.xlu2 %1498  ;;  %v1386_v29 = vrot.slane %v1375_v47, 4 }
 0x303   :  { %v1506_v52 = vrot.slane %v3585_v51, 4 }
 0x305   :  { %v1513_v35 = vsel %vm111_vm0, %v1505_v50, %v1506_v52  ;;  %v2848_v53 = vld [vmem:[#allocation2 + $0x164] sm:$0xf0]  ;;  %v2695_v58 = vld [vmem:[#allocation2 + $0x168] sm:$0xf0] }
 0x306   :  { %v1514_v33 = vsel %vm405_vm4, %v1497_v46, %v1513_v35  ;;  %v2694_v2 = vor.u32 %v2848_v53, %v2693_v55  ;;  %v2698_v48 = vor.u32 %v2845_v3, %v2695_v58 }
 0x307   :  { %1527 = vst [vmem:[#allocation2 + $0x138] sm:$0xff] %v1514_v33 }
 0x308   :  { %1972 = vmatpush.bf16.msrb.mxu3 %v2694_v2  ;;  %2000 = vmatpush.bf16.msrb.mxu1 %v2698_v48  ;;  %v2621_v48 = vld [vmem:[#allocation2 + $0xc0] sm:$0xf] }
 0x309   :  { %v1263_v61 = vpop.permute.xlu0 %1262  ;;  %v1553_v1 = vpop.permute.xlu1 %1552 }
 0x30a   :  { %v1272_v9 = vrot.slane %v1263_v61, 4  ;;  %v1559_v62 = vrot.slane %v1553_v1, 4  ;;  %v1445_v63 = vpop.permute.xlu2 %1444 }
 0x30b   :  { %v1453_v6 = vrot.slane %v1445_v63, 4 }
 0x30c   :  { %v1278_v19 = vsel %vm111_vm0, %v1271_v7, %v1272_v9  ;;  %v1280_v8 = vsel %vm169_vm10, %v1263_v61, %v1272_v9  ;;  %v1567_v10 = vsel %vm111_vm0, %v1558_v32, %v1559_v62  ;;  %v1569_v14 = vsel %vm458_vm3, %v1553_v1, %v1559_v62  ;;  %v2839_v7 = vld [vmem:[#allocation2 + $0x124] sm:$0xf] }
 0x30d   :  { %v1279_v11 = vsel %vm169_vm10, %v3549_v0, %v1278_v19  ;;  %1294 = vst.msk [vmem:[#allocation2 + $0x40] sm:$0xff] %vm3108_vm2, %v1280_v8  ;;  %v1568_v13 = vsel %vm458_vm3, %v1551_v37, %v1567_v10  ;;  %v1461_v16 = vsel %vm111_vm0, %v1453_v6, %v1454_v5  ;;  %v2827_v61 = vld [vmem:[#allocation2 + $0xc4] sm:$0xf]  ;;  %v2597_v8 = vld [vmem:[#allocation2 + $0x90] sm:$0xf] }
 0x30e   :  { %1293 = vst [vmem:[#allocation2 + $0x38] sm:$0xff] %v1279_v11  ;;  %v1462_v18 = vsel %vm352_vm5, %v1445_v63, %v1461_v16  ;;  %v2842_v21 = vld [vmem:[#allocation2 + $0x134] sm:$0xf0]  ;;  %v2671_v22 = vld [vmem:[#allocation2 + $0x138] sm:$0xf0] }
 0x30f   :  { %1580 = vst [vmem:[#allocation2 + $0x170] sm:$0xff] %v1568_v13  ;;  %v2670_v0 = vor.u32 %v2842_v21, %v2669_v17  ;;  %v2674_v56 = vor.u32 %v2839_v7, %v2671_v22  ;;  %v2821_v10 = vld [vmem:[#allocation2 + $0x94] sm:$0xf]  ;;  %v2573_v21 = vld [vmem:[#allocation2 + $0x60] sm:$0xf] }
 0x310   :  { %1581 = vst.msk [vmem:[#allocation2 + $0x178] sm:$0xff] %vm3108_vm2, %v1569_v14 }
 0x311   :  { %1475 = vst [vmem:[#allocation2 + $0x108] sm:$0xff] %v1462_v18  ;;  %1973 = vmatpush.bf16.msrb.mxu3 %v2670_v0  ;;  %2001 = vmatpush.bf16.msrb.mxu1 %v2674_v56  ;;  %v3610_v26 = vpop.permute.xlu0 %1376  ;;  %v1317_v54 = vpop.permute.xlu1 %1316 }
 0x312   :  { %v1387_v30 = vrot.slane %v3610_v26, 4  ;;  %v1315_v24 = vpop.permute.xlu2 %1314  ;;  %v1325_v55 = vrot.slane %v1317_v54, 4 }
 0x313   :  { %v1324_v36 = vrot.slane %v1315_v24, 4 }
 0x314   :  { %v1396_v4 = vsel %vm111_vm0, %v1386_v29, %v1387_v30  ;;  %v2815_v29 = vld [vmem:[#allocation2 + $0x64] sm:$0xf] }
 0x315   :  { %v1397_v37 = vsel %vm285_vm6, %v1375_v47, %v1396_v4  ;;  %v1330_v27 = vsel %vm111_vm0, %v1323_v60, %v1324_v36  ;;  %v1332_v32 = vsel %vm222_vm8, %v1315_v24, %v1324_v36  ;;  %v2830_v60 = vld [vmem:[#allocation2 + $0xd4] sm:$0xf0] }
 0x316   :  { %1411 = vst [vmem:[#allocation2 + $0xa8] sm:$0xff] %v1397_v37  ;;  %v1331_v20 = vsel %vm222_vm8, %v3530_v23, %v1330_v27  ;;  %v2623_v23 = vld [vmem:[#allocation2 + $0xd8] sm:$0xf0]  ;;  %v2622_v62 = vor.u32 %v2830_v60, %v2621_v48 }
 0x317   :  { %1345 = vst [vmem:[#allocation2 + $0x68] sm:$0xff] %v1331_v20  ;;  %v2626_v63 = vor.u32 %v2827_v61, %v2623_v23 }
 0x318   :  { %1346 = vst.msk [vmem:[#allocation2 + $0x70] sm:$0xff] %vm3108_vm2, %v1332_v32  ;;  %v2836_v39 = vld [vmem:[#allocation2 + $0x104] sm:$0xf0]  ;;  %v2647_v40 = vld [vmem:[#allocation2 + $0x108] sm:$0xf0] }
 0x319   :  { %v2646_v43 = vor.u32 %v2836_v39, %v2645_v57  ;;  %v2650_v46 = vor.u32 %v2833_v41, %v2647_v40  ;;  %v3625_v47 = vpop.permute.xlu0 %1318  ;;  %v1501_v50 = vpop.permute.xlu1 %1500  ;;  %v2549_v39 = vld [vmem:[#allocation2 + $0x30] sm:$0xf]  ;;  %v2809_v40 = vld [vmem:[#allocation2 + $0x34] sm:$0xf] }
 0x31a   :  { %v1326_v35 = vrot.slane %v3625_v47, 4  ;;  %v1507_v53 = vrot.slane %v1501_v50, 4  ;;  %v3628_v3 = vpop.permute.xlu2 %1602 }
 0x31b   :  { %1974 = vmatpush.bf16.msrb.mxu3 %v2646_v43  ;;  %2002 = vmatpush.bf16.msrb.mxu1 %v2650_v46 }
 0x31c   :  { %v1333_v58 = vsel %vm111_vm0, %v1325_v55, %v1326_v35  ;;  %v1515_v33 = vsel %vm111_vm0, %v1506_v52, %v1507_v53  ;;  %v1517_v2 = vsel %vm405_vm4, %v1501_v50, %v1507_v53 }
 0x31d   :  { %v1334_v1 = vsel %vm222_vm8, %v1317_v54, %v1333_v58  ;;  %v1516_v9 = vsel %vm405_vm4, %v3585_v51, %v1515_v33  ;;  %1529 = vst.msk [vmem:[#allocation2 + $0x148] sm:$0xff] %vm3108_vm2, %v1517_v2  ;;  %v2824_v6 = vld [vmem:[#allocation2 + $0xa4] sm:$0xf0]  ;;  %v2599_v19 = vld [vmem:[#allocation2 + $0xa8] sm:$0xf0]  ;;  %v1610_v33 = vrot.slane %v3628_v3, 4 }
 0x31e   :  { %1347 = vst [vmem:[#allocation2 + $0x78] sm:$0xff] %v1334_v1  ;;  %v2598_v52 = vor.u32 %v2824_v6, %v2597_v8  ;;  %v2602_v11 = vor.u32 %v2821_v10, %v2599_v19 }
 0x31f   :  { %1528 = vst [vmem:[#allocation2 + $0x140] sm:$0xff] %v1516_v9  ;;  %1975 = vmatpush.bf16.msrb.mxu3 %v2622_v62  ;;  %2003 = vmatpush.bf16.msrb.mxu1 %v2626_v63 }
 0x321   :  { %v1267_v13 = vpop.permute.xlu0 %1266  ;;  %v1265_v14 = vpop.permute.xlu1 %1264 }
 0x322   :  { %v1274_v16 = vrot.slane %v1267_v13, 4  ;;  %v1273_v17 = vrot.slane %v1265_v14, 4  ;;  %v1599_v51 = vpop.permute.xlu2 %1598 }
 0x323   :  { %1976 = vmatpush.bf16.msrb.mxu3 %v2598_v52  ;;  %2004 = vmatpush.bf16.msrb.mxu1 %v2602_v11  ;;  %v1608_v7 = vrot.slane %v1599_v51, 4 }
 0x324   :  { %v1281_v18 = vsel %vm111_vm0, %v1273_v17, %v1274_v16  ;;  %v2703_v17 = vld [vmem:[#allocation2 + $0x170] sm:$0xf0]  ;;  %v2844_v12 = vld [vmem:[#allocation2 + $0x144] sm:$0xf0] }
 0x325   :  { %v1282_v22 = vsel %vm169_vm10, %v1265_v14, %v1281_v18  ;;  %v1614_v0 = vsel %vm111_vm0, %v1607_v38, %v1608_v7  ;;  %v1616_v56 = vsel %vm511_vm7, %v1599_v51, %v1608_v7  ;;  %v2818_v54 = vld [vmem:[#allocation2 + $0x74] sm:$0xf0]  ;;  %v2575_v24 = vld [vmem:[#allocation2 + $0x78] sm:$0xf0]  ;;  %v2851_v14 = vld [vmem:[#allocation2 + $0x184] sm:$0xf] }
 0x326   :  { %1295 = vst [vmem:[#allocation2 + $0x48] sm:$0xff] %v1282_v22  ;;  %v1615_v36 = vsel %vm511_vm7, %v3536_v49, %v1614_v0  ;;  %v2574_v4 = vor.u32 %v2818_v54, %v2573_v21  ;;  %v2578_v37 = vor.u32 %v2815_v29, %v2575_v24  ;;  %v2517_v51 = vld [vmem:[#allocation9] sm:$0xf]  ;;  %v2802_v54 = vld [vmem:[#allocation9 + $0x4] sm:$0xf0] }
 0x327   :  { %1629 = vst [vmem:[#allocation2 + $0x188] sm:$0xff] %v1615_v36  ;;  %v2525_v0 = vld [vmem:[#allocation2] sm:$0xf]  ;;  %v2801_v29 = vld [vmem:[#allocation9 + $0x4] sm:$0xf] }
 0x328   :  { %1630 = vst.msk [vmem:[#allocation2 + $0x190] sm:$0xff] %vm3108_vm2, %v1616_v56  ;;  %1977 = vmatpush.bf16.msrb.mxu3 %v2574_v4  ;;  %2005 = vmatpush.bf16.msrb.mxu1 %v2578_v37  ;;  %v2803_v56 = vld [vmem:[#allocation2 + $0x4] sm:$0xf]  ;;  %v2519_v24 = vld [vmem:[#allocation9 + $0x8] sm:$0xf0] }
 0x329   :  { %v1449_v27 = vpop.permute.xlu1 %1448  ;;  %v3652_v32 = vpop.permute.xlu0 %1214 }
 0x32a   :  { %v1455_v38 = vrot.slane %v1449_v27, 4  ;;  %v1269_v20 = vpop.permute.xlu2 %1268  ;;  %v1222_v2 = vrot.slane %v3652_v32, 4 }
 0x32b   :  { %v1275_v57 = vrot.slane %v1269_v20, 4 }
 0x32c   :  { %v1463_v41 = vsel %vm111_vm0, %v1454_v5, %v1455_v38  ;;  %v1465_v49 = vsel %vm352_vm5, %v1449_v27, %v1455_v38 }
 0x32d   :  { %v1464_v43 = vsel %vm352_vm5, %v3576_v31, %v1463_v41  ;;  %1477 = vst.msk [vmem:[#allocation2 + $0x118] sm:$0xff] %vm3108_vm2, %v1465_v49  ;;  %v1283_v46 = vsel %vm111_vm0, %v1274_v16, %v1275_v57  ;;  %v1285_v50 = vsel %vm169_vm10, %v1269_v20, %v1275_v57  ;;  %v2812_v60 = vld [vmem:[#allocation2 + $0x44] sm:$0xf0]  ;;  %v2551_v55 = vld [vmem:[#allocation2 + $0x48] sm:$0xf0] }
 0x32e   :  { %1476 = vst [vmem:[#allocation2 + $0x110] sm:$0xff] %v1464_v43  ;;  %v1284_v53 = vsel %vm169_vm10, %v1267_v13, %v1283_v46  ;;  %v2550_v5 = vor.u32 %v2812_v60, %v2549_v39  ;;  %v2554_v23 = vor.u32 %v2809_v40, %v2551_v55  ;;  %v2717_v13 = vld [vmem:[#allocation2 + $0x180] sm:$0xf]  ;;  %v2849_v16 = vld [vmem:[#allocation2 + $0x16c] sm:$0xf0]  ;;  %v3694_v40 = vor.u32 %v2801_v29, %v2519_v24 }
 0x32f   :  { %1296 = vst [vmem:[#allocation2 + $0x50] sm:$0xff] %v1284_v53  ;;  %v2701_v49 = vld [vmem:[#allocation2 + $0x158] sm:$0xf]  ;;  %v2846_v39 = vld [vmem:[#allocation2 + $0x15c] sm:$0xf] }
 0x330   :  { %1297 = vst.msk [vmem:[#allocation2 + $0x58] sm:$0xff] %vm3108_vm2, %v1285_v50  ;;  %1978 = vmatpush.bf16.msrb.mxu3 %v2550_v5  ;;  %2006 = vmatpush.bf16.msrb.mxu1 %v2554_v23  ;;  %v2706_v43 = vor.u32 %v2846_v39, %v2703_v17  ;;  %v2843_v46 = vld [vmem:[#allocation2 + $0x13c] sm:$0xf0]  ;;  %v3696_v50 = vor.u32 %v2802_v54, %v2517_v51  ;;  %v2679_v53 = vld [vmem:[#allocation2 + $0x140] sm:$0xf0] }
 0x331   :  { %v1601_v31 = vpop.permute.xlu0 %1600  ;;  %v1213_v58 = vpop.permute.xlu1 %1212  ;;  %v2828_v17 = vld [vmem:[#allocation2 + $0xcc] sm:$0xf] }
 0x332   :  { %v1609_v48 = vrot.slane %v1601_v31, 4  ;;  %v1221_v61 = vrot.slane %v1213_v58, 4  ;;  %v1381_v6 = vpop.permute.xlu2 %1380  ;;  %v2852_v54 = vld [vmem:[#allocation2 + $0x18c] sm:$0xf] }
 0x333   :  { %v1389_v10 = vrot.slane %v1381_v6, 4  ;;  %v2687_v39 = vld [vmem:[#allocation2 + $0x148] sm:$0xf0] }
 0x334   :  { %v1617_v1 = vsel %vm111_vm0, %v1609_v48, %v1610_v33  ;;  %v1229_v9 = vsel %vm111_vm0, %v1221_v61, %v1222_v2  ;;  %v2840_v48 = vld [vmem:[#allocation2 + $0x12c] sm:$0xf] }
 0x335   :  { %v1618_v62 = vsel %vm511_vm7, %v1601_v31, %v1617_v1  ;;  %v1230_v63 = vsel %vm113_vm11, %v1213_v58, %v1229_v9  ;;  %v2677_v31 = vld [vmem:[#allocation2 + $0x128] sm:$0xf] }
 0x336   :  { %1631 = vst [vmem:[#allocation2 + $0x198] sm:$0xff] %v1618_v62  ;;  %v2678_v58 = vor.u32 %v2843_v46, %v2677_v31  ;;  %v2682_v62 = vor.u32 %v2840_v48, %v2679_v53  ;;  %v2841_v53 = vld [vmem:[#allocation2 + $0x134] sm:$0xf]  ;;  %v2813_v31 = vld [vmem:[#allocation2 + $0x4c] sm:$0xf0] }
 0x337   :  { %1243 = vst [vmem:[#allocation2 + $0x18] sm:$0xff] %v1230_v63  ;;  %v2838_v48 = vld [vmem:[#allocation2 + $0x114] sm:$0xf0] }
 0x339   :  { %v1379_v19 = vpop.permute.xlu0 %1378  ;;  %v1321_v8 = vpop.permute.xlu1 %1320 }
 0x33a   :  { %v1388_v52 = vrot.slane %v1379_v19, 4  ;;  %v1327_v11 = vrot.slane %v1321_v8, 4 }
 0x33c   :  { %v1398_v7 = vsel %vm111_vm0, %v1387_v30, %v1388_v52  ;;  %v1400_v18 = vsel %vm111_vm0, %v1388_v52, %v1389_v10  ;;  %v1335_v21 = vsel %vm111_vm0, %v1326_v35, %v1327_v11  ;;  %v1337_v22 = vsel %vm222_vm8, %v1321_v8, %v1327_v11  ;;  %v2655_v8 = vld [vmem:[#allocation2 + $0x110] sm:$0xf0]  ;;  %v2834_v10 = vld [vmem:[#allocation2 + $0xfc] sm:$0xf] }
 0x33d   :  { %v1399_v36 = vsel %vm285_vm6, %v3610_v26, %v1398_v7  ;;  %v1401_v4 = vsel %vm285_vm6, %v1379_v19, %v1400_v18  ;;  %v1336_v30 = vsel %vm222_vm8, %v3625_v47, %v1335_v21  ;;  %1349 = vst.msk [vmem:[#allocation2 + $0x88] sm:$0xff] %vm3108_vm2, %v1337_v22  ;;  %v2854_v37 = vld [vmem:[#allocation2 + $0x194] sm:$0xf0]  ;;  %v2719_v35 = vld [vmem:[#allocation2 + $0x198] sm:$0xf0]  ;;  %v2702_v47 = vor.u32 %v2849_v16, %v2701_v49 }
 0x33e   :  { %1412 = vst [vmem:[#allocation2 + $0xb0] sm:$0xff] %v1399_v36  ;;  %v2806_v27 = vld [vmem:[#allocation2 + $0x14] sm:$0xf0]  ;;  %v2718_v38 = vor.u32 %v2854_v37, %v2717_v13  ;;  %v2527_v20 = vld [vmem:[#allocation2 + $0x18] sm:$0xf0]  ;;  %v2722_v57 = vor.u32 %v2851_v14, %v2719_v35  ;;  %v2658_v52 = vor.u32 %v2834_v10, %v2655_v8 }
 0x33f   :  { %1413 = vst.msk [vmem:[#allocation2 + $0xb8] sm:$0xff] %vm3108_vm2, %v1401_v4  ;;  %v2526_v41 = vor.u32 %v2806_v27, %v2525_v0  ;;  %v2530_v26 = vor.u32 %v2803_v56, %v2527_v20  ;;  %v2837_v19 = vld [vmem:[#allocation2 + $0x10c] sm:$0xf0]  ;;  %v2831_v13 = vld [vmem:[#allocation2 + $0xdc] sm:$0xf0] }
 0x340   :  { %1348 = vst [vmem:[#allocation2 + $0x80] sm:$0xff] %v1336_v30  ;;  %1993 = vmatpush.bf16.msrb.mxu2 %v2718_v38  ;;  %2021 = vmatpush.bf16.msrb.mxu0 %v2722_v57  ;;  %v2629_v16 = vld [vmem:[#allocation2 + $0xc8] sm:$0xf]  ;;  %v2850_v22 = vld [vmem:[#allocation2 + $0x174] sm:$0xf0] }
 0x341   :  { %1979 = vmatpush.bf16.msrb.mxu3 %v2526_v41  ;;  %2007 = vmatpush.bf16.msrb.mxu1 %v2530_v26  ;;  %v1217_v60 = vpop.permute.xlu0 %1216  ;;  %v1605_v55 = vpop.permute.xlu1 %1604  ;;  %v2630_v7 = vor.u32 %v2831_v13, %v2629_v16  ;;  %v2725_v21 = vld [vmem:[#allocation2 + $0x188] sm:$0xf]  ;;  %v2711_v0 = vld [vmem:[#allocation2 + $0x178] sm:$0xf0]  ;;  %v2605_v37 = vld [vmem:[#allocation2 + $0x98] sm:$0xf] }
 0x342   :  { %v1223_v5 = vrot.slane %v1217_v60, 4  ;;  %v1611_v23 = vrot.slane %v1605_v55, 4  ;;  %v2822_v35 = vld [vmem:[#allocation2 + $0x9c] sm:$0xf]  ;;  %v2709_v20 = vld [vmem:[#allocation2 + $0x160] sm:$0xf] }
 0x343   :  { %2739 = vmatmul.msk.bf16.vlgmr.msrb.gmra.mxu2 %vm868_vm9, %v3694_v40  ;;  %2740 = vmatmul.msk.bf16.vlgmr.msrb.gmra.mxu0 %vm868_vm9, %v3694_v40  ;;  %v2847_v57 = vld [vmem:[#allocation2 + $0x164] sm:$0xf]  ;;  %v2804_v13 = vld [vmem:[#allocation2 + $0xc] sm:$0xf] }
 0x344   :  { %2028 = vmatpush.bf16.msra.mxu2 %v2702_v47  ;;  %2056 = vmatpush.bf16.msra.mxu0 %v2706_v43  ;;  %v1231_v61 = vsel %vm111_vm0, %v1222_v2, %v1223_v5  ;;  %v1233_v1 = vsel %vm113_vm11, %v1217_v60, %v1223_v5  ;;  %v1619_v9 = vsel %vm111_vm0, %v1610_v33, %v1611_v23  ;;  %v2653_v33 = vld [vmem:[#allocation2 + $0xf8] sm:$0xf]  ;;  %v2581_v47 = vld [vmem:[#allocation2 + $0x68] sm:$0xf]  ;;  %v2816_v43 = vld [vmem:[#allocation2 + $0x6c] sm:$0xf] }
 0x345   :  { %1980 = vmatmul.bf16.vlgmr.msrb.gmra.mxu3 %v3696_v50  ;;  %v1232_v63 = vsel %vm113_vm11, %v3652_v32, %v1231_v61  ;;  %1245 = vst.msk [vmem:[#allocation2 + $0x28] sm:$0xff] %vm3108_vm2, %v1233_v1  ;;  %v1620_v6 = vsel %vm511_vm7, %v3628_v3, %v1619_v9  ;;  %v1621_v2 = vsel %vm511_vm7, %v1605_v55, %v1611_v23  ;;  %v2631_v3 = vld [vmem:[#allocation2 + $0xe0] sm:$0xf0]  ;;  %v2825_v29 = vld [vmem:[#allocation2 + $0xac] sm:$0xf0] }
 0x346   :  { %2008 = vmatmul.bf16.vlgmr.msrb.gmra.mxu1 %v3696_v50  ;;  %1244 = vst [vmem:[#allocation2 + $0x20] sm:$0xff] %v1232_v63  ;;  %v2654_v32 = vor.u32 %v2837_v19, %v2653_v33  ;;  %v2634_v18 = vor.u32 %v2828_v17, %v2631_v3  ;;  %v2607_v24 = vld [vmem:[#allocation2 + $0xb0] sm:$0xf0]  ;;  %v2606_v27 = vor.u32 %v2825_v29, %v2605_v37  ;;  %v2685_v55 = vld [vmem:[#allocation2 + $0x130] sm:$0xf] }
 0x347   :  { %1632 = vst [vmem:[#allocation2 + $0x1a0] sm:$0xff] %v1620_v6  ;;  %v2610_v38 = vor.u32 %v2822_v35, %v2607_v24  ;;  %v2714_v41 = vor.u32 %v2847_v57, %v2711_v0  ;;  %v2819_v26 = vld [vmem:[#allocation2 + $0x7c] sm:$0xf0]  ;;  %v2583_v49 = vld [vmem:[#allocation2 + $0x80] sm:$0xf0]  ;;  %v2686_v5 = vor.u32 %v2844_v12, %v2685_v55  ;;  %v2690_v23 = vor.u32 %v2841_v53, %v2687_v39 }
 0x348   :  { %2029 = vmatpush.bf16.msra.mxu2 %v2678_v58  ;;  %2057 = vmatpush.bf16.msra.mxu0 %v2682_v62  ;;  %1633 = vst.msk [vmem:[#allocation2 + $0x1a8] sm:$0xff] %vm3108_vm2, %v1621_v2  ;;  %v2582_v46 = vor.u32 %v2819_v26, %v2581_v47  ;;  %v2586_v60 = vor.u32 %v2816_v43, %v2583_v49  ;;  %v2559_v58 = vld [vmem:[#allocation2 + $0x50] sm:$0xf0]  ;;  %v2663_v61 = vld [vmem:[#allocation2 + $0x118] sm:$0xf0] }
 0x349   :  { %v1373_v11 = vpop.permute.xlu0 %1372  ;;  %v2557_v1 = vld [vmem:[#allocation2 + $0x38] sm:$0xf]  ;;  %v2810_v9 = vld [vmem:[#allocation2 + $0x3c] sm:$0xf]  ;;  %v2661_v6 = vld [vmem:[#allocation2 + $0x100] sm:$0xf] }
 0x34a   :  { %v1385_v14 = vrot.slane %v1373_v11, 4  ;;  %v2558_v62 = vor.u32 %v2813_v31, %v2557_v1  ;;  %v2562_v63 = vor.u32 %v2810_v9, %v2559_v58  ;;  %v2835_v2 = vld [vmem:[#allocation2 + $0x104] sm:$0xf]  ;;  %v2662_v19 = vor.u32 %v2838_v48, %v2661_v6  ;;  %v2639_v11 = vld [vmem:[#allocation2 + $0xe8] sm:$0xf0] }
 0x34b   :  { %v2666_v8 = vor.u32 %v2835_v2, %v2663_v61  ;;  %v2853_v0 = vld [vmem:[#allocation2 + $0x194] sm:$0xf]  ;;  %v2820_v37 = vld [vmem:[#allocation2 + $0x84] sm:$0xf0]  ;;  %v2591_v35 = vld [vmem:[#allocation2 + $0x88] sm:$0xf0] }
 0x34c   :  { %2030 = vmatpush.bf16.msra.mxu2 %v2654_v32  ;;  %2058 = vmatpush.bf16.msra.mxu0 %v2658_v52  ;;  %v1394_v51 = vsel %vm111_vm0, %v1384_v15, %v1385_v14  ;;  %v2533_v32 = vld [vmem:[#allocation2 + $0x8] sm:$0xf]  ;;  %v2565_v26 = vld [vmem:[#allocation2 + $0x40] sm:$0xf]  ;;  %v2811_v49 = vld [vmem:[#allocation2 + $0x44] sm:$0xf] }
 0x34d   :  { %v1395_v56 = vsel %vm285_vm6, %v3545_v59, %v1394_v51  ;;  %v2710_v59 = vor.u32 %v2850_v22, %v2709_v20  ;;  %v2807_v33 = vld [vmem:[#allocation2 + $0x1c] sm:$0xf0]  ;;  %v2535_v10 = vld [vmem:[#allocation2 + $0x20] sm:$0xf0]  ;;  %v2832_v52 = vld [vmem:[#allocation2 + $0xe4] sm:$0xf0] }
 0x34e   :  { %1410 = vst.msk [vmem:[#allocation2 + $0xa0] sm:$0xff] %vm3108_vm2, %v1395_v56  ;;  %v2855_v36 = vld [vmem:[#allocation2 + $0x19c] sm:$0xf0]  ;;  %v2727_v4 = vld [vmem:[#allocation2 + $0x1a0] sm:$0xf0]  ;;  %v2534_v16 = vor.u32 %v2807_v33, %v2533_v32  ;;  %v2538_v17 = vor.u32 %v2804_v13, %v2535_v10 }
 0x34f   :  { %v2726_v30 = vor.u32 %v2855_v36, %v2725_v21  ;;  %v2730_v15 = vor.u32 %v2852_v54, %v2727_v4  ;;  %v2856_v3 = vld [vmem:[#allocation2 + $0x1a4] sm:$0xf0]  ;;  %v2735_v14 = vld [vmem:[#allocation2 + $0x1a8] sm:$0xf0]  ;;  %v2637_v51 = vld [vmem:[#allocation2 + $0xd0] sm:$0xf] }
 0x350   :  { %2031 = vmatpush.bf16.msra.mxu2 %v2630_v7  ;;  %2059 = vmatpush.bf16.msra.mxu0 %v2634_v18  ;;  %v2829_v7 = vld [vmem:[#allocation2 + $0xd4] sm:$0xf]  ;;  %v2638_v18 = vor.u32 %v2832_v52, %v2637_v51  ;;  %v2733_v22 = vld [vmem:[#allocation2 + $0x190] sm:$0xf]  ;;  %v2738_v54 = vor.u32 %v2853_v0, %v2735_v14  ;;  %v2826_v36 = vld [vmem:[#allocation2 + $0xb4] sm:$0xf0] }
 0x351   :  { %2049 = vmatpush.bf16.msra.mxu3 %v2726_v30  ;;  %2077 = vmatpush.bf16.msra.mxu1 %v2730_v15  ;;  %v2642_v21 = vor.u32 %v2829_v7, %v2639_v11  ;;  %v2734_v56 = vor.u32 %v2856_v3, %v2733_v22  ;;  %v2615_v4 = vld [vmem:[#allocation2 + $0xb8] sm:$0xf0]  ;;  %v2808_v47 = vld [vmem:[#allocation2 + $0x24] sm:$0xf0]  ;;  %v2543_v43 = vld [vmem:[#allocation2 + $0x28] sm:$0xf0] }
 0x354   :  { %2032 = vmatpush.bf16.msra.mxu2 %v2606_v27  ;;  %2060 = vmatpush.bf16.msra.mxu0 %v2610_v38  ;;  %v2589_v27 = vld [vmem:[#allocation2 + $0x70] sm:$0xf]  ;;  %v2817_v38 = vld [vmem:[#allocation2 + $0x74] sm:$0xf] }
 0x355   :  { %2084 = vmatpush.bf16.msrb.mxu3 %v2710_v59  ;;  %2112 = vmatpush.bf16.msrb.mxu1 %v2714_v41  ;;  %v2613_v29 = vld [vmem:[#allocation2 + $0xa0] sm:$0xf]  ;;  %v2823_v24 = vld [vmem:[#allocation2 + $0xa4] sm:$0xf]  ;;  %v2590_v20 = vor.u32 %v2820_v37, %v2589_v27  ;;  %v2594_v57 = vor.u32 %v2817_v38, %v2591_v35  ;;  %v2814_v59 = vld [vmem:[#allocation2 + $0x54] sm:$0xf0] }
 0x356   :  { %2741 = vmatmul.msk.bf16.vlgmr.msra.gmra.mxu3 %vm868_vm9, %v3694_v40  ;;  %2742 = vmatmul.msk.bf16.vlgmr.msra.gmra.mxu1 %vm868_vm9, %v3694_v40  ;;  %v2614_v30 = vor.u32 %v2826_v36, %v2613_v29  ;;  %v2618_v15 = vor.u32 %v2823_v24, %v2615_v4  ;;  %v2567_v41 = vld [vmem:[#allocation2 + $0x58] sm:$0xf0]  ;;  %v2566_v12 = vor.u32 %v2814_v59, %v2565_v26 }
 0x357   :  { %v2570_v39 = vor.u32 %v2811_v49, %v2567_v41 }
 0x358   :  { %2033 = vmatpush.bf16.msra.mxu2 %v2582_v46  ;;  %2061 = vmatpush.bf16.msra.mxu0 %v2586_v60  ;;  %v2541_v46 = vld [vmem:[#allocation2 + $0x10] sm:$0xf]  ;;  %v2805_v60 = vld [vmem:[#allocation2 + $0x14] sm:$0xf] }
 0x359   :  { %2085 = vmatpush.bf16.msrb.mxu3 %v2686_v5  ;;  %2113 = vmatpush.bf16.msrb.mxu1 %v2690_v23  ;;  %v2542_v55 = vor.u32 %v2808_v47, %v2541_v46  ;;  %v2546_v53 = vor.u32 %v2805_v60, %v2543_v43 }
 0x35c   :  { %2034 = vmatpush.bf16.msra.mxu2 %v2558_v62  ;;  %2062 = vmatpush.bf16.msra.mxu0 %v2562_v63 }
 0x35d   :  { %2086 = vmatpush.bf16.msrb.mxu3 %v2662_v19  ;;  %2114 = vmatpush.bf16.msrb.mxu1 %v2666_v8 }
 0x360   :  { %2035 = vmatpush.bf16.msra.mxu2 %v2534_v16  ;;  %2063 = vmatpush.bf16.msra.mxu0 %v2538_v17 }
 0x361   :  { %2087 = vmatpush.bf16.msrb.mxu3 %v2638_v18  ;;  %2115 = vmatpush.bf16.msrb.mxu1 %v2642_v21 }
 0x363   :  { %2036 = vmatmul.bf16.vlgmr.msra.gmra.mxu2 %v3696_v50  ;;  %2064 = vmatmul.bf16.vlgmr.msra.gmra.mxu0 %v3696_v50 }
 0x364   :  { %2105 = vmatpush.bf16.msrb.mxu2 %v2734_v56  ;;  %2133 = vmatpush.bf16.msrb.mxu0 %v2738_v54 }
 0x365   :  { %2088 = vmatpush.bf16.msrb.mxu3 %v2614_v30  ;;  %2116 = vmatpush.bf16.msrb.mxu1 %v2618_v15 }
 0x369   :  { %2089 = vmatpush.bf16.msrb.mxu3 %v2590_v20  ;;  %2117 = vmatpush.bf16.msrb.mxu1 %v2594_v57 }
 0x36d   :  { %2090 = vmatpush.bf16.msrb.mxu3 %v2566_v12  ;;  %2118 = vmatpush.bf16.msrb.mxu1 %v2570_v39 }
 0x371   :  { %2091 = vmatpush.bf16.msrb.mxu3 %v2542_v55  ;;  %2119 = vmatpush.bf16.msrb.mxu1 %v2546_v53 }
 0x373   :  { %2743 = vmatmul.msk.bf16.vlgmr.msrb.gmra.mxu2 %vm868_vm9, %v3694_v40  ;;  %2744 = vmatmul.msk.bf16.vlgmr.msrb.gmra.mxu0 %vm868_vm9, %v3694_v40 }
 0x374   :  { %2092 = vmatmul.bf16.vlgmr.msrb.gmra.mxu3 %v3696_v50  ;;  %2120 = vmatmul.bf16.vlgmr.msrb.gmra.mxu1 %v3696_v50 }
 0x3c0   :  { %v2023_v23 = vpop.f32.mrf.mxu0 }
 0x3c3   :  { %v2009_v5 = vpop.f32.mrf.mxu1 }
 0x3c4   :  { %v3741_v40 = vadd.f32 %v2023_v23, %v2009_v5 }
 0x3c6   :  { %v1995_v58 = vpop.f32.mrf.mxu2  ;;  %v2141_v32 = vmul.f32 %v3741_v40, %v3349_v28 }
 0x3c8   :  { %v1981_v31 = vpop.f32.mrf.mxu3  ;;  %v2025_v61 = vpop.f32.mrf.mxu0  ;;  %v2169_v7 = vmul.f32 %v2141_v32, %v3741_v40 }
 0x3c9   :  { %v3739_v33 = vadd.f32 %v1995_v58, %v1981_v31 }
 0x3cb   :  { %v2011_v48 = vpop.f32.mrf.mxu1  ;;  %v2140_v50 = vmul.f32 %v3739_v33, %v3345_v42 }
 0x3cc   :  { %v3753_v16 = vadd.f32 %v2025_v61, %v2011_v48 }
 0x3cd   :  { %v2168_v51 = vmul.f32 %v2140_v50, %v3739_v33  ;;  %v2152_v22 = vadd.f32 %v2141_v32, %v2140_v50 }
 0x3ce   :  { %v1997_v62 = vpop.f32.mrf.mxu2  ;;  %v2147_v29 = vmul.f32 %v3753_v16, %v3349_v28 }
 0x3cf   :  { %v2180_v24 = vadd.f32 %v2169_v7, %v2168_v51 }
 0x3d0   :  { %v1983_v1 = vpop.f32.mrf.mxu3  ;;  %v2175_v28 = vmul.f32 %v2147_v29, %v3753_v16 }
 0x3d1   :  { %v3751_v14 = vadd.f32 %v1997_v62, %v1983_v1 }
 0x3d3   :  { %v2079_v9 = vpop.f32.mrf.mxu1  ;;  %v2146_v54 = vmul.f32 %v3751_v14, %v3345_v42 }
 0x3d5   :  { %v2174_v20 = vmul.f32 %v2146_v54, %v3751_v14  ;;  %v2160_v12 = vadd.f32 %v2147_v29, %v2146_v54 }
 0x3d7   :  { %v2188_v53 = vadd.f32 %v2175_v28, %v2174_v20 }
 0x3d9   :  { %v2051_v6 = vpop.f32.mrf.mxu3 }
 0x3db   :  { %v2081_v19 = vpop.f32.mrf.mxu1 }
 0x3e0   :  { %v2065_v63 = vpop.f32.mrf.mxu0 }
 0x3e1   :  { %v2053_v11 = vpop.f32.mrf.mxu3  ;;  %v3757_v18 = vadd.f32 %v2079_v9, %v2065_v63 }
 0x3e3   :  { %v2143_v36 = vmul.f32 %v3757_v18, %v3373_v45 }
 0x3e5   :  { %v2171_v59 = vmul.f32 %v2143_v36, %v3757_v18 }
 0x3e6   :  { %v2037_v2 = vpop.f32.mrf.mxu2 }
 0x3e7   :  { %v3743_v10 = vadd.f32 %v2051_v6, %v2037_v2 }
 0x3e8   :  { %v2067_v8 = vpop.f32.mrf.mxu0 }
 0x3e9   :  { %v2142_v13 = vmul.f32 %v3743_v10, %v3355_v34  ;;  %v3779_v41 = vadd.f32 %v2081_v19, %v2067_v8 }
 0x3eb   :  { %v2170_v0 = vmul.f32 %v2142_v13, %v3743_v10  ;;  %v2153_v4 = vadd.f32 %v2152_v22, %v2142_v13  ;;  %v2149_v5 = vmul.f32 %v3779_v41, %v3373_v45 }
 0x3ed   :  { %v2181_v35 = vadd.f32 %v2180_v24, %v2170_v0  ;;  %v2154_v49 = vadd.f32 %v2153_v4, %v2143_v36  ;;  %v2177_v2 = vmul.f32 %v2149_v5, %v3779_v41 }
 0x3ee   :  { %v2039_v52 = vpop.f32.mrf.mxu2 }
 0x3ef   :  { %v3762_v56 = vadd.f32 %v2053_v11, %v2039_v52  ;;  %v2182_v55 = vadd.f32 %v2181_v35, %v2171_v59 }
 0x3f0   :  { %v2135_v3 = vpop.f32.mrf.mxu0 }
 0x3f1   :  { %v2121_v17 = vpop.f32.mrf.mxu1  ;;  %v2148_v27 = vmul.f32 %v3762_v56, %v3355_v34 }
 0x3f2   :  { %v3759_v21 = vadd.f32 %v2135_v3, %v2121_v17 }
 0x3f3   :  { %v2176_v43 = vmul.f32 %v2148_v27, %v3762_v56  ;;  %v2161_v23 = vadd.f32 %v2160_v12, %v2148_v27 }
 0x3f4   :  { %v2145_v37 = vmul.f32 %v3759_v21, %v3367_v25 }
 0x3f5   :  { %v2189_v62 = vadd.f32 %v2188_v53, %v2176_v43  ;;  %v2162_v19 = vadd.f32 %v2161_v23, %v2149_v5 }
 0x3f6   :  { %v2107_v30 = vpop.f32.mrf.mxu2  ;;  %v2156_v34 = vsel %vm1069_vm12, %v2145_v37, 0.0  ;;  %v2173_v47 = vmul.f32 %v2145_v37, %v3759_v21 }
 0x3f7   :  { %v2093_v15 = vpop.f32.mrf.mxu3  ;;  %v2190_v52 = vadd.f32 %v2189_v62, %v2177_v2 }
 0x3f8   :  { %v3774_v38 = vadd.f32 %v2107_v30, %v2093_v15  ;;  %v2137_v42 = vpop.f32.mrf.mxu0  ;;  %v2184_v1 = vsel %vm1069_vm12, %v2173_v47, 0.0 }
 0x3f9   :  { %v2123_v57 = vpop.f32.mrf.mxu1 }
 0x3fa   :  { %v2144_v26 = vmul.f32 %v3774_v38, %v3371_v44  ;;  %v3783_v39 = vadd.f32 %v2137_v42, %v2123_v57 }
 0x3fc   :  { %v2172_v46 = vmul.f32 %v2144_v26, %v3774_v38  ;;  %v2155_v60 = vadd.f32 %v2154_v49, %v2144_v26  ;;  %v2151_v9 = vmul.f32 %v3783_v39, %v3367_v25 }
 0x3fe   :  { %v2109_v31 = vpop.f32.mrf.mxu2  ;;  %v2157_v58 = vadd.f32 %v2156_v34, %v2155_v60  ;;  %v2183_v48 = vadd.f32 %v2182_v55, %v2172_v46  ;;  %v2179_v8 = vmul.f32 %v2151_v9, %v3783_v39  ;;  %v2164_v25 = vsel %vm1069_vm12, %v2151_v9, 0.0 }
 0x3ff   :  { %v2095_v61 = vpop.f32.mrf.mxu3 }
 0x400   :  { %v3794_v63 = vadd.f32 %v2109_v31, %v2095_v61  ;;  %2158 = vadd.xlane.f32.xlu1 %v2157_v58  ;;  %v2185_v6 = vadd.f32 %v2184_v1, %v2183_v48  ;;  %v2192_v3 = vsel %vm1069_vm12, %v2179_v8, 0.0 }
 0x402   :  { %v2150_v45 = vmul.f32 %v3794_v63, %v3371_v44  ;;  %2186 = vadd.xlane.f32.xlu2 %v2185_v6 }
 0x404   :  { %v2178_v50 = vmul.f32 %v2150_v45, %v3794_v63  ;;  %v2163_v32 = vadd.f32 %v2162_v19, %v2150_v45 }
 0x406   :  { %v2165_v11 = vadd.f32 %v2164_v25, %v2163_v32  ;;  %v2191_v13 = vadd.f32 %v2190_v52, %v2178_v50 }
 0x408   :  { %2166 = vadd.xlane.f32.xlu0 %v2165_v11  ;;  %v2193_v17 = vadd.f32 %v2192_v3, %v2191_v13 }
 0x40a   :  { %2194 = vadd.xlane.f32.xlu1 %v2193_v17 }
 0x473   :  { %v2159_v51 = vpop.xlane.xlu1 %2158 }
 0x474   :  { %v2196_v7 = vmul.f32 0.001953125, %v2159_v51 }
 0x475   :  { %v2187_v44 = vpop.xlane.xlu2 %2186 }
 0x476   :  { %v2198_v22 = vmul.f32 0.001953125, %v2187_v44  ;;  %v2200_v0 = vmul.f32 %v2196_v7, %v2196_v7  ;;  %v2206_v47 = vsub.f32 %v3739_v33, %v2196_v7  ;;  %v2207_v43 = vsub.f32 %v3741_v40, %v2196_v7 }
 0x477   :  { %v2208_v46 = vsub.f32 %v3743_v10, %v2196_v7  ;;  %v2209_v60 = vsub.f32 %v3757_v18, %v2196_v7  ;;  %v2210_v5 = vsub.f32 %v3774_v38, %v2196_v7  ;;  %v2211_v48 = vsub.f32 %v3759_v21, %v2196_v7 }
 0x478   :  { %v2202_v54 = vsub.f32 %v2198_v22, %v2200_v0 }
 0x47a   :  { %v2204_v29 = vmax.f32 %v2202_v54, 0.0 }
 0x47b   :  { %v2167_v24 = vpop.xlane.xlu0 %2166 }
 0x47c   :  { %v2218_v36 = vadd.f32 1e-05, %v2204_v29  ;;  %v3803_v4 = vmul.f32 0.001953125, %v2167_v24 }
 0x47d   :  { %v2195_v30 = vpop.xlane.xlu1 %2194 }
 0x47e   :  { %2881 = vrsqrt.f32 %v2218_v36  ;;  %v2199_v15 = vmul.f32 0.001953125, %v2195_v30  ;;  %v2201_v37 = vmul.f32 %v3803_v4, %v3803_v4  ;;  %vm2226_vm2 = vweird.f32 %v2218_v36 }
 0x47f   :  { %v2212_v18 = vsub.f32 %v3751_v14, %v3803_v4  ;;  %v2213_v38 = vsub.f32 %v3753_v16, %v3803_v4  ;;  %v2214_v21 = vsub.f32 %v3762_v56, %v3803_v4  ;;  %v2215_v62 = vsub.f32 %v3779_v41, %v3803_v4 }
 0x480   :  { %v2203_v35 = vsub.f32 %v2199_v15, %v2201_v37  ;;  %v2216_v2 = vsub.f32 %v3794_v63, %v3803_v4  ;;  %v2217_v14 = vsub.f32 %v3783_v39, %v3803_v4 }
 0x482   :  { %v2205_v27 = vmax.f32 %v2203_v35, 0.0 }
 0x484   :  { %v2882_v42 = vpop.eup %2881  ;;  %v2219_v20 = vadd.f32 1e-05, %v2205_v27 }
 0x485   :  { %v2221_v28 = vmul.f32 %v2882_v42, %v2218_v36  ;;  %vm2227_vm0 = vweird.f32 %v2882_v42 }
 0x486   :  { %2883 = vrsqrt.f32 %v2219_v20  ;;  %vm2228_vm3 = vmor %vm2226_vm2, %vm2227_vm0  ;;  %vm2236_vm5 = vweird.f32 %v2219_v20 }
 0x487   :  { %v2222_v57 = vmul.f32 %v2882_v42, %v2221_v28 }
 0x489   :  { %v2223_v59 = vmul.f32 0.5, %v2222_v57 }
 0x48b   :  { %v2224_v26 = vsub.f32 1.5, %v2223_v59 }
 0x48c   :  { %v2884_v49 = vpop.eup %2883 }
 0x48d   :  { %v2225_v12 = vmul.f32 %v2882_v42, %v2224_v26  ;;  %v2231_v34 = vmul.f32 %v2884_v49, %v2219_v20  ;;  %vm2237_vm4 = vweird.f32 %v2884_v49 }
 0x48e   :  { %vm2238_vm6 = vmor %vm2236_vm5, %vm2237_vm4 }
 0x48f   :  { %v2229_v55 = vsel %vm2228_vm3, %v2882_v42, %v2225_v12  ;;  %v2232_v53 = vmul.f32 %v2884_v49, %v2231_v34 }
 0x490   :  { %v2240_v23 = vmul.f32 %v2229_v55, %v2206_v47  ;;  %v2241_v31 = vmul.f32 %v2229_v55, %v2207_v43  ;;  %v2242_v58 = vmul.f32 %v2229_v55, %v2208_v46  ;;  %v2243_v61 = vmul.f32 %v2229_v55, %v2209_v60 }
 0x491   :  { %v2233_v1 = vmul.f32 0.5, %v2232_v53  ;;  %v2244_v9 = vmul.f32 %v2229_v55, %v2210_v5  ;;  %v2245_v33 = vmul.f32 %v2229_v55, %v2211_v48 }
 0x492   :  { %2252 = vst [vmem:[#allocation12] sm:$0xff] %v2240_v23 }
 0x493   :  { %2253 = vst [vmem:[#allocation12 + $0x8] sm:$0xff] %v2241_v31  ;;  %v2234_v40 = vsub.f32 1.5, %v2233_v1 }
 0x494   :  { %2254 = vst [vmem:[#allocation12 + $0x10] sm:$0xff] %v2242_v58 }
 0x495   :  { %2255 = vst [vmem:[#allocation12 + $0x18] sm:$0xff] %v2243_v61  ;;  %v2235_v10 = vmul.f32 %v2884_v49, %v2234_v40 }
 0x496   :  { %2256 = vst [vmem:[#allocation12 + $0x20] sm:$0xff] %v2244_v9 }
 0x497   :  { %2257 = vst.msk [vmem:[#allocation12 + $0x28] sm:$0xff] %vm1069_vm12, %v2245_v33  ;;  %v2239_v6 = vsel %vm2238_vm6, %v2884_v49, %v2235_v10 }
 0x498   :  { %v2246_v45 = vmul.f32 %v2239_v6, %v2212_v18  ;;  %v2247_v19 = vmul.f32 %v2239_v6, %v2213_v38  ;;  %v2248_v8 = vmul.f32 %v2239_v6, %v2214_v21  ;;  %v2249_v16 = vmul.f32 %v2239_v6, %v2215_v62 }
 0x499   :  { %v2250_v56 = vmul.f32 %v2239_v6, %v2216_v2  ;;  %v2251_v41 = vmul.f32 %v2239_v6, %v2217_v14 }
 0x49a   :  { %2258 = vst [vmem:[#allocation12 + $0x30] sm:$0xff] %v2246_v45 }
 0x49b   :  { %2259 = vst [vmem:[#allocation12 + $0x38] sm:$0xff] %v2247_v19 }
 0x49c   :  { %2260 = vst [vmem:[#allocation12 + $0x40] sm:$0xff] %v2248_v8 }
 0x49d   :  { %2261 = vst [vmem:[#allocation12 + $0x48] sm:$0xff] %v2249_v16 }
 0x49e   :  { %2262 = vst [vmem:[#allocation12 + $0x50] sm:$0xff] %v2250_v56 }
 0x49f   :  { %2263 = vst.msk [vmem:[#allocation12 + $0x58] sm:$0xff] %vm1069_vm12, %v2251_v41 }
 0x4a0   :  { %2276 = dma.vmem_to_hbm [thread:$0]  %s2269_s18, 1536, %s2271_s21, [#allocation6], %s3031_s22, %s3031_s22, %s3032_s23  }
 0x4a1   :  { %3011 = dma.done.wait [#allocation6], 1536  }
 0x4a2   :  { %3012 = vsyncadd [#allocation6], 4294965760 }
 0x4a3   :  { %2281 = vsyncpa [#allocation5], 1 }
 0x4a4   :  { %2282 = vsyncpa [#allocation8], 1 }
 0x4a5   :  { %2283 = vsyncpa [#allocation11], 1 }
 0x4a6   :  { %2284 = vsyncpa [#allocation6], 1 }

</bundles_post_ra>
